<compile_context>
chip_gen: v6e
topology: v6e:2x2x1
jax: 0.10.0
libtpu: 0.0.40
codegen_flags: <defaults>
</compile_context>

<pallas_src>
import functools

import jax
import jax.numpy as jnp
from jax import lax
from jax.experimental import pallas as pl
from jax.experimental.pallas import tpu as pltpu

HIDDEN = 128  # nn.LSTMCell(hidden_size=128) in the PyTorch module
HEADS_PAD = 128  # lane-dense head output width (real heads = 11+2+1+1 = 15)


def _sigmoid_tanh(v):
    # sigmoid(x) == 0.5 * (tanh(x/2) + 1): one EUP tanh, no exp + divide.
    return 0.5 * (jnp.tanh(0.5 * v) + 1.0)


def _rnn_mtfc_kernel(
    x_ref,        # (T_pad, n_in)   input sequence (mask_x folded into w_ih)
    w_ih_ref,     # (n_in, 4H)      LSTM input weights, transposed, mask_x-folded
    w_hh_ref,     # (H, 4H)         LSTM hidden weights, transposed, mask_h-folded
    bias_ref,     # (1, 4H)         b_ih + b_hh
    w_heads_ref,  # (H, HEADS_PAD)  fused fc1|fc2|fc3|fc4 weights, lane-padded
    b_heads_ref,  # (1, HEADS_PAD)  fused biases, lane-padded
    heads_ref,    # (T_pad, HEADS_PAD) out
    xproj_ref,    # (T_pad, 4H) VMEM scratch: precomputed input projection
):
    T_pad = x_ref.shape[0]
    H = HIDDEN
    n_blk = T_pad // 8

    # --- Prologue: sequence-parallel input projection (one MXU matmul, fully
    # out of the serial recurrence chain). ---
    xproj_ref[...] = (
        jnp.dot(x_ref[...], w_ih_ref[...], preferred_element_type=jnp.float32)
        + bias_ref[...]
    )

    # --- Recurrence: 8-step blocks, aligned (8, *) tile loads/stores. ---
    def block_body(blk, carry):
        h, c = carry                                   # (1, H) each
        base = pl.multiple_of(blk * 8, 8)
        xblk = xproj_ref[pl.ds(base, 8), :]            # aligned (8, 4H) load

        hs = []
        for s in range(8):                             # statically unrolled
            # Per step: one (1,H)@(H,4H) matmul + gate math.  w_hh_ref is read
            # inside the step (not hoisted across the loop) to avoid pinning a
            # 256 KiB value in the vreg file.
            gates = xblk[s:s + 1, :] + jnp.dot(
                h, w_hh_ref[...], preferred_element_type=jnp.float32)
            # PyTorch LSTMCell gate order: input, forget, cell(g), output
            i_g = _sigmoid_tanh(gates[:, 0 * H:1 * H])
            f_g = _sigmoid_tanh(gates[:, 1 * H:2 * H])
            g_g = jnp.tanh(gates[:, 2 * H:3 * H])
            o_g = _sigmoid_tanh(gates[:, 3 * H:4 * H])
            c = f_g * c + i_g * g_g
            h = o_g * jnp.tanh(c)
            hs.append(h)

        h_blk = jnp.concatenate(hs, axis=0)            # (8, H), in registers
        # Fused MtFc heads for this block: (8, H) @ (H, 128) -> dense-lane
        # (8, 128) store (no masked vst, no separate epilogue).
        heads_ref[pl.ds(base, 8), :] = (
            jnp.dot(h_blk, w_heads_ref[...], preferred_element_type=jnp.float32)
            + b_heads_ref[...]
        )
        return (h, c)

    h0 = jnp.zeros((1, H), jnp.float32)
    c0 = jnp.zeros((1, H), jnp.float32)
    unroll = True if n_blk <= 8 else False
    lax.fori_loop(0, n_blk, block_body, (h0, c0), unroll=unroll)


def _vmem_cap_bytes():
    """Generation-aware scoped-VMEM cap (75% of queried capacity)."""
    try:
        info = pltpu.get_tpu_info()
        cap = getattr(info, "vmem_capacity_bytes", None)
        if cap:
            return int(0.75 * cap)
    except Exception:
        pass
    return 48 * 1024 * 1024  # conservative fallback (valid on v7x's 64 MiB)


@functools.partial(jax.jit, static_argnames=())
def rnn_model4_forward(X, mask_x, mask_h, params):
    """X: (T, 1, input_size) float32 (PyTorch seq-major, batch=1)."""
    T = X.shape[0]
    n_in = X.shape[-1]
    H = HIDDEN
    x2d = X.reshape(T, n_in)  # squeeze batch dim (glue)

    # Pad time to a multiple of 8 so the recurrence runs in aligned sublane
    # blocks; padded steps only produce extra rows that are sliced off.
    T_pad = ((T + 7) // 8) * 8
    if T_pad != T:
        x2d = jnp.pad(x2d, ((0, T_pad - T), (0, 0)))

    # Fold the (time-constant) dropout masks into the weight matrices:
    #   (x * mask_x) @ W_ih.T == x @ (W_ih * mask_x).T
    #   (h * mask_h) @ W_hh.T == h @ (W_hh * mask_h).T
    w_ih_t = (params["w_ih"] * mask_x).T                        # (n_in, 4H)
    w_hh_t = (params["w_hh"] * mask_h).T                        # (H, 4H)
    bias = (params["b_ih"] + params["b_hh"]).reshape(1, 4 * H)  # (1, 4H)

    # Fuse the 4 MtFc heads into a single matmul; pad to 128 output lanes so
    # the kernel writes dense full-lane tiles.
    w_heads = jnp.concatenate(
        [params["w1"].T, params["w2"].T, params["w3"].T, params["w4"].T],
        axis=1)                                                 # (H, n_heads)
    b_heads = jnp.concatenate(
        [params["b1"], params["b2"], params["b3"], params["b4"]]).reshape(1, -1)
    n_step = params["w1"].shape[0]
    n_exp = params["w2"].shape[0]
    n_rsd = params["w3"].shape[0]
    n_heads = w_heads.shape[1]
    w_heads = jnp.pad(w_heads, ((0, 0), (0, HEADS_PAD - n_heads)))
    b_heads = jnp.pad(b_heads, ((0, 0), (0, HEADS_PAD - n_heads)))

    vmem = pl.BlockSpec(memory_space=pltpu.MemorySpace.VMEM)
    inputs = (x2d, w_ih_t, w_hh_t, bias, w_heads, b_heads)

    # Explicit VMEM budget (inputs + output + scratch, 2x headroom), capped
    # per-generation.
    est_bytes = 4 * (
        T_pad * n_in + n_in * 4 * H + H * 4 * H + 4 * H
        + H * HEADS_PAD + HEADS_PAD + T_pad * HEADS_PAD
        + T_pad * 4 * H
    )
    vmem_limit = int(min(max(2 * est_bytes, 16 * 1024 * 1024),
                         _vmem_cap_bytes()))

    heads = pl.pallas_call(
        _rnn_mtfc_kernel,
        out_shape=jax.ShapeDtypeStruct((T_pad, HEADS_PAD), jnp.float32),
        in_specs=[vmem] * len(inputs),
        out_specs=vmem,
        scratch_shapes=[pltpu.VMEM((T_pad, 4 * H), jnp.float32)],
        compiler_params=pltpu.CompilerParams(vmem_limit_bytes=vmem_limit),
    )(*inputs)

    # Slice padded rows/lanes back into the 4 PyTorch outputs (XLA glue).
    heads = heads[:T, :n_heads]
    step = heads[:, :n_step]
    experience = heads[:, n_step:n_step + n_exp]
    rsd = heads[:, n_step + n_exp:n_step + n_exp + n_rsd]
    s = heads[:, n_step + n_exp + n_rsd:]
    return step, experience, rsd, s


def _reference_forward(X, mask_x, mask_h, params):
    """Pure-JAX reference mirroring the PyTorch module."""
    T = X.shape[0]
    H = HIDDEN
    x2d = X.reshape(T, -1)
    h = jnp.zeros((1, H), jnp.float32)
    c = jnp.zeros((1, H), jnp.float32)
    hs = []
    for t in range(T):
        x_t = x2d[t:t + 1] * mask_x
        h_m = h * mask_h
        gates = (x_t @ params["w_ih"].T + params["b_ih"]
                 + h_m @ params["w_hh"].T + params["b_hh"])
        i_g = jax.nn.sigmoid(gates[:, 0 * H:1 * H])
        f_g = jax.nn.sigmoid(gates[:, 1 * H:2 * H])
        g_g = jnp.tanh(gates[:, 2 * H:3 * H])
        o_g = jax.nn.sigmoid(gates[:, 3 * H:4 * H])
        c = f_g * c + i_g * g_g
        h = o_g * jnp.tanh(c)
        hs.append(h)
    out = jnp.concatenate(hs, axis=0)  # (T, H)
    step = out @ params["w1"].T + params["b1"]
    experience = out @ params["w2"].T + params["b2"]
    rsd = out @ params["w3"].T + params["b3"]
    s = out @ params["w4"].T + params["b4"]
    return step, experience, rsd, s


def _init_params(key, input_size):
    H = HIDDEN
    ks = jax.random.split(key, 12)
    scale = 1.0 / jnp.sqrt(H)
    u = lambda k, shp: jax.random.uniform(k, shp, jnp.float32, -scale, scale)
    return {
        "w_ih": u(ks[0], (4 * H, input_size)),
        "w_hh": u(ks[1], (4 * H, H)),
        "b_ih": u(ks[2], (4 * H,)),
        "b_hh": u(ks[3], (4 * H,)),
        "w1": u(ks[4], (11, H)), "b1": u(ks[5], (11,)),   # fc1: n_step=11
        "w2": u(ks[6], (2, H)),  "b2": u(ks[7], (2,)),    # fc2: n_experience=2
        "w3": u(ks[8], (1, H)),  "b3": u(ks[9], (1,)),    # fc3: n_rsd=1
        "w4": u(ks[10], (1, H)), "b4": u(ks[11], (1,)),   # fc4: 1
    }


if __name__ == "__main__":
    key = jax.random.PRNGKey(0)
    k_x, k_p, k_mx, k_mh = jax.random.split(key, 4)

    T = 8
    input_size = 16
    X = jax.random.normal(k_x, (T, 1, input_size), jnp.float32)

    params = _init_params(k_p, input_size)

    # nn.Dropout(p=0.6) applied to ones -> Bernoulli keep mask (p_keep=0.4)
    # scaled by 1/0.4; drawn once per forward (as in the PyTorch module, which
    # samples the masks before the time loop and reuses them each step).
    p_keep = 0.4
    mask_x = jax.random.bernoulli(k_mx, p_keep, (1, input_size)).astype(
        jnp.float32) / p_keep
    mask_h = jax.random.bernoulli(k_mh, p_keep, (1, HIDDEN)).astype(
        jnp.float32) / p_keep

    outs = rnn_model4_forward(X, mask_x, mask_h, params)
    outs = jax.block_until_ready(outs)

    refs = _reference_forward(X, mask_x, mask_h, params)
    for o, r in zip(outs, refs):
        assert o.shape == r.shape and o.dtype == r.dtype
        assert jnp.allclose(o, r, atol=1e-5, rtol=1e-5), "mismatch vs reference"

    print("KERNEL_OK")
</pallas_src>

<mosaic_0001>
module attributes {stable_mosaic.version = 11 : i64} {
  func.func @_rnn_mtfc_kernel(%arg0: memref<8x16xf32, #tpu.memory_space<vmem>>, %arg1: memref<16x512xf32, #tpu.memory_space<vmem>>, %arg2: memref<128x512xf32, #tpu.memory_space<vmem>>, %arg3: memref<1x512xf32, #tpu.memory_space<vmem>>, %arg4: memref<128x128xf32, #tpu.memory_space<vmem>>, %arg5: memref<1x128xf32, #tpu.memory_space<vmem>>, %arg6: memref<8x128xf32, #tpu.memory_space<vmem>>, %arg7: memref<8x512xf32, #tpu.memory_space<vmem>>) attributes {dimension_semantics = [], scalar_prefetch = 0 : i64, scratch_operands = 1 : i64, tpu.core_type = #tpu.core_type<tc>} {
    %c0 = arith.constant 0 : index
    %c0_0 = arith.constant 0 : index
    %0 = vector.load %arg0[%c0, %c0_0] : memref<8x16xf32, #tpu.memory_space<vmem>>, vector<8x16xf32>
    %c0_1 = arith.constant 0 : index
    %c0_2 = arith.constant 0 : index
    %1 = vector.load %arg1[%c0_1, %c0_2] : memref<16x512xf32, #tpu.memory_space<vmem>>, vector<16x512xf32>
    %cst = arith.constant dense<0.000000e+00> : vector<8x512xf32>
    %2 = tpu.matmul %0, %1, %cst {dimension_numbers = #tpu.dot_dimension_numbers<[1], [0], [0], [1], [0, 0, 1, 1], [], []>} : vector<8x16xf32>, vector<16x512xf32>, vector<8x512xf32> -> vector<8x512xf32>
    %c0_3 = arith.constant 0 : index
    %c0_4 = arith.constant 0 : index
    %3 = vector.load %arg3[%c0_3, %c0_4] : memref<1x512xf32, #tpu.memory_space<vmem>>, vector<1x512xf32>
    %4 = vector.broadcast %3 : vector<1x512xf32> to vector<8x512xf32>
    %5 = arith.addf %2, %4 : vector<8x512xf32>
    %c0_5 = arith.constant 0 : index
    %c0_6 = arith.constant 0 : index
    %6 = vector.load %arg7[%c0_5, %c0_6] : memref<8x512xf32, #tpu.memory_space<vmem>>, vector<8x512xf32>
    tpu.vector_store %arg7[%c0_5, %c0_6], %5 {strides = array<i32>} : memref<8x512xf32, #tpu.memory_space<vmem>>, vector<8x512xf32>,
    %cst_7 = arith.constant 0.000000e+00 : f32
    %7 = vector.broadcast %cst_7 : f32 to vector<1x128xf32>
    %cst_8 = arith.constant 0.000000e+00 : f32
    %8 = vector.broadcast %cst_8 : f32 to vector<1x128xf32>
    %c0_i32 = arith.constant 0 : i32
    %c8_i32 = arith.constant 8 : i32
    %9 = arith.muli %c0_i32, %c8_i32 : i32
    %10 = tpu.assume_multiple %9, 8 : i32
    %11 = arith.index_cast %10 : i32 to index
    %c0_9 = arith.constant 0 : index
    %12 = vector.load %arg7[%11, %c0_9] : memref<8x512xf32, #tpu.memory_space<vmem>>, vector<8x512xf32>
    %13 = vector.extract_strided_slice %12 {offsets = [0, 0], sizes = [1, 512], strides = [1, 1]} : vector<8x512xf32> to vector<1x512xf32>
    %c0_10 = arith.constant 0 : index
    %c0_11 = arith.constant 0 : index
    %14 = vector.load %arg2[%c0_10, %c0_11] : memref<128x512xf32, #tpu.memory_space<vmem>>, vector<128x512xf32>
    %cst_12 = arith.constant dense<0.000000e+00> : vector<1x512xf32>
    %15 = tpu.matmul %7, %14, %cst_12 {dimension_numbers = #tpu.dot_dimension_numbers<[1], [0], [0], [1], [0, 0, 1, 1], [], []>} : vector<1x128xf32>, vector<128x512xf32>, vector<1x512xf32> -> vector<1x512xf32>
    %16 = arith.addf %13, %15 : vector<1x512xf32>
    %17 = vector.extract_strided_slice %16 {offsets = [0, 0], sizes = [1, 128], strides = [1, 1]} : vector<1x512xf32> to vector<1x128xf32>
    %cst_13 = arith.constant 5.000000e-01 : f32
    %18 = vector.broadcast %cst_13 : f32 to vector<1x128xf32>
    %19 = arith.mulf %18, %17 : vector<1x128xf32>
    %20 = math.tanh %19 : vector<1x128xf32>
    %cst_14 = arith.constant 1.000000e+00 : f32
    %21 = vector.broadcast %cst_14 : f32 to vector<1x128xf32>
    %22 = arith.addf %20, %21 : vector<1x128xf32>
    %cst_15 = arith.constant 5.000000e-01 : f32
    %23 = vector.broadcast %cst_15 : f32 to vector<1x128xf32>
    %24 = arith.mulf %23, %22 : vector<1x128xf32>
    %25 = vector.extract_strided_slice %16 {offsets = [0, 128], sizes = [1, 128], strides = [1, 1]} : vector<1x512xf32> to vector<1x128xf32>
    %cst_16 = arith.constant 5.000000e-01 : f32
    %26 = vector.broadcast %cst_16 : f32 to vector<1x128xf32>
    %27 = arith.mulf %26, %25 : vector<1x128xf32>
    %28 = math.tanh %27 : vector<1x128xf32>
    %cst_17 = arith.constant 1.000000e+00 : f32
    %29 = vector.broadcast %cst_17 : f32 to vector<1x128xf32>
    %30 = arith.addf %28, %29 : vector<1x128xf32>
    %cst_18 = arith.constant 5.000000e-01 : f32
    %31 = vector.broadcast %cst_18 : f32 to vector<1x128xf32>
    %32 = arith.mulf %31, %30 : vector<1x128xf32>
    %33 = vector.extract_strided_slice %16 {offsets = [0, 256], sizes = [1, 128], strides = [1, 1]} : vector<1x512xf32> to vector<1x128xf32>
    %34 = math.tanh %33 : vector<1x128xf32>
    %35 = vector.extract_strided_slice %16 {offsets = [0, 384], sizes = [1, 128], strides = [1, 1]} : vector<1x512xf32> to vector<1x128xf32>
    %cst_19 = arith.constant 5.000000e-01 : f32
    %36 = vector.broadcast %cst_19 : f32 to vector<1x128xf32>
    %37 = arith.mulf %36, %35 : vector<1x128xf32>
    %38 = math.tanh %37 : vector<1x128xf32>
    %cst_20 = arith.constant 1.000000e+00 : f32
    %39 = vector.broadcast %cst_20 : f32 to vector<1x128xf32>
    %40 = arith.addf %38, %39 : vector<1x128xf32>
    %cst_21 = arith.constant 5.000000e-01 : f32
    %41 = vector.broadcast %cst_21 : f32 to vector<1x128xf32>
    %42 = arith.mulf %41, %40 : vector<1x128xf32>
    %43 = arith.mulf %32, %8 : vector<1x128xf32>
    %44 = arith.mulf %24, %34 : vector<1x128xf32>
    %45 = arith.addf %43, %44 : vector<1x128xf32>
    %46 = math.tanh %45 : vector<1x128xf32>
    %47 = arith.mulf %42, %46 : vector<1x128xf32>
    %48 = vector.extract_strided_slice %12 {offsets = [1, 0], sizes = [1, 512], strides = [1, 1]} : vector<8x512xf32> to vector<1x512xf32>
    %c0_22 = arith.constant 0 : index
    %c0_23 = arith.constant 0 : index
    %49 = vector.load %arg2[%c0_22, %c0_23] : memref<128x512xf32, #tpu.memory_space<vmem>>, vector<128x512xf32>
    %cst_24 = arith.constant dense<0.000000e+00> : vector<1x512xf32>
    %50 = tpu.matmul %47, %49, %cst_24 {dimension_numbers = #tpu.dot_dimension_numbers<[1], [0], [0], [1], [0, 0, 1, 1], [], []>} : vector<1x128xf32>, vector<128x512xf32>, vector<1x512xf32> -> vector<1x512xf32>
    %51 = arith.addf %48, %50 : vector<1x512xf32>
    %52 = vector.extract_strided_slice %51 {offsets = [0, 0], sizes = [1, 128], strides = [1, 1]} : vector<1x512xf32> to vector<1x128xf32>
    %cst_25 = arith.constant 5.000000e-01 : f32
    %53 = vector.broadcast %cst_25 : f32 to vector<1x128xf32>
    %54 = arith.mulf %53, %52 : vector<1x128xf32>
    %55 = math.tanh %54 : vector<1x128xf32>
    %cst_26 = arith.constant 1.000000e+00 : f32
    %56 = vector.broadcast %cst_26 : f32 to vector<1x128xf32>
    %57 = arith.addf %55, %56 : vector<1x128xf32>
    %cst_27 = arith.constant 5.000000e-01 : f32
    %58 = vector.broadcast %cst_27 : f32 to vector<1x128xf32>
    %59 = arith.mulf %58, %57 : vector<1x128xf32>
    %60 = vector.extract_strided_slice %51 {offsets = [0, 128], sizes = [1, 128], strides = [1, 1]} : vector<1x512xf32> to vector<1x128xf32>
    %cst_28 = arith.constant 5.000000e-01 : f32
    %61 = vector.broadcast %cst_28 : f32 to vector<1x128xf32>
    %62 = arith.mulf %61, %60 : vector<1x128xf32>
    %63 = math.tanh %62 : vector<1x128xf32>
    %cst_29 = arith.constant 1.000000e+00 : f32
    %64 = vector.broadcast %cst_29 : f32 to vector<1x128xf32>
    %65 = arith.addf %63, %64 : vector<1x128xf32>
    %cst_30 = arith.constant 5.000000e-01 : f32
    %66 = vector.broadcast %cst_30 : f32 to vector<1x128xf32>
    %67 = arith.mulf %66, %65 : vector<1x128xf32>
    %68 = vector.extract_strided_slice %51 {offsets = [0, 256], sizes = [1, 128], strides = [1, 1]} : vector<1x512xf32> to vector<1x128xf32>
    %69 = math.tanh %68 : vector<1x128xf32>
    %70 = vector.extract_strided_slice %51 {offsets = [0, 384], sizes = [1, 128], strides = [1, 1]} : vector<1x512xf32> to vector<1x128xf32>
    %cst_31 = arith.constant 5.000000e-01 : f32
    %71 = vector.broadcast %cst_31 : f32 to vector<1x128xf32>
    %72 = arith.mulf %71, %70 : vector<1x128xf32>
    %73 = math.tanh %72 : vector<1x128xf32>
    %cst_32 = arith.constant 1.000000e+00 : f32
    %74 = vector.broadcast %cst_32 : f32 to vector<1x128xf32>
    %75 = arith.addf %73, %74 : vector<1x128xf32>
    %cst_33 = arith.constant 5.000000e-01 : f32
    %76 = vector.broadcast %cst_33 : f32 to vector<1x128xf32>
    %77 = arith.mulf %76, %75 : vector<1x128xf32>
    %78 = arith.mulf %67, %45 : vector<1x128xf32>
    %79 = arith.mulf %59, %69 : vector<1x128xf32>
    %80 = arith.addf %78, %79 : vector<1x128xf32>
    %81 = math.tanh %80 : vector<1x128xf32>
    %82 = arith.mulf %77, %81 : vector<1x128xf32>
    %83 = vector.extract_strided_slice %12 {offsets = [2, 0], sizes = [1, 512], strides = [1, 1]} : vector<8x512xf32> to vector<1x512xf32>
    %c0_34 = arith.constant 0 : index
    %c0_35 = arith.constant 0 : index
    %84 = vector.load %arg2[%c0_34, %c0_35] : memref<128x512xf32, #tpu.memory_space<vmem>>, vector<128x512xf32>
    %cst_36 = arith.constant dense<0.000000e+00> : vector<1x512xf32>
    %85 = tpu.matmul %82, %84, %cst_36 {dimension_numbers = #tpu.dot_dimension_numbers<[1], [0], [0], [1], [0, 0, 1, 1], [], []>} : vector<1x128xf32>, vector<128x512xf32>, vector<1x512xf32> -> vector<1x512xf32>
    %86 = arith.addf %83, %85 : vector<1x512xf32>
    %87 = vector.extract_strided_slice %86 {offsets = [0, 0], sizes = [1, 128], strides = [1, 1]} : vector<1x512xf32> to vector<1x128xf32>
    %cst_37 = arith.constant 5.000000e-01 : f32
    %88 = vector.broadcast %cst_37 : f32 to vector<1x128xf32>
    %89 = arith.mulf %88, %87 : vector<1x128xf32>
    %90 = math.tanh %89 : vector<1x128xf32>
    %cst_38 = arith.constant 1.000000e+00 : f32
    %91 = vector.broadcast %cst_38 : f32 to vector<1x128xf32>
    %92 = arith.addf %90, %91 : vector<1x128xf32>
    %cst_39 = arith.constant 5.000000e-01 : f32
    %93 = vector.broadcast %cst_39 : f32 to vector<1x128xf32>
    %94 = arith.mulf %93, %92 : vector<1x128xf32>
    %95 = vector.extract_strided_slice %86 {offsets = [0, 128], sizes = [1, 128], strides = [1, 1]} : vector<1x512xf32> to vector<1x128xf32>
    %cst_40 = arith.constant 5.000000e-01 : f32
    %96 = vector.broadcast %cst_40 : f32 to vector<1x128xf32>
    %97 = arith.mulf %96, %95 : vector<1x128xf32>
    %98 = math.tanh %97 : vector<1x128xf32>
    %cst_41 = arith.constant 1.000000e+00 : f32
    %99 = vector.broadcast %cst_41 : f32 to vector<1x128xf32>
    %100 = arith.addf %98, %99 : vector<1x128xf32>
    %cst_42 = arith.constant 5.000000e-01 : f32
    %101 = vector.broadcast %cst_42 : f32 to vector<1x128xf32>
    %102 = arith.mulf %101, %100 : vector<1x128xf32>
    %103 = vector.extract_strided_slice %86 {offsets = [0, 256], sizes = [1, 128], strides = [1, 1]} : vector<1x512xf32> to vector<1x128xf32>
    %104 = math.tanh %103 : vector<1x128xf32>
    %105 = vector.extract_strided_slice %86 {offsets = [0, 384], sizes = [1, 128], strides = [1, 1]} : vector<1x512xf32> to vector<1x128xf32>
    %cst_43 = arith.constant 5.000000e-01 : f32
    %106 = vector.broadcast %cst_43 : f32 to vector<1x128xf32>
    %107 = arith.mulf %106, %105 : vector<1x128xf32>
    %108 = math.tanh %107 : vector<1x128xf32>
    %cst_44 = arith.constant 1.000000e+00 : f32
    %109 = vector.broadcast %cst_44 : f32 to vector<1x128xf32>
    %110 = arith.addf %108, %109 : vector<1x128xf32>
    %cst_45 = arith.constant 5.000000e-01 : f32
    %111 = vector.broadcast %cst_45 : f32 to vector<1x128xf32>
    %112 = arith.mulf %111, %110 : vector<1x128xf32>
    %113 = arith.mulf %102, %80 : vector<1x128xf32>
    %114 = arith.mulf %94, %104 : vector<1x128xf32>
    %115 = arith.addf %113, %114 : vector<1x128xf32>
    %116 = math.tanh %115 : vector<1x128xf32>
    %117 = arith.mulf %112, %116 : vector<1x128xf32>
    %118 = vector.extract_strided_slice %12 {offsets = [3, 0], sizes = [1, 512], strides = [1, 1]} : vector<8x512xf32> to vector<1x512xf32>
    %c0_46 = arith.constant 0 : index
    %c0_47 = arith.constant 0 : index
    %119 = vector.load %arg2[%c0_46, %c0_47] : memref<128x512xf32, #tpu.memory_space<vmem>>, vector<128x512xf32>
    %cst_48 = arith.constant dense<0.000000e+00> : vector<1x512xf32>
    %120 = tpu.matmul %117, %119, %cst_48 {dimension_numbers = #tpu.dot_dimension_numbers<[1], [0], [0], [1], [0, 0, 1, 1], [], []>} : vector<1x128xf32>, vector<128x512xf32>, vector<1x512xf32> -> vector<1x512xf32>
    %121 = arith.addf %118, %120 : vector<1x512xf32>
    %122 = vector.extract_strided_slice %121 {offsets = [0, 0], sizes = [1, 128], strides = [1, 1]} : vector<1x512xf32> to vector<1x128xf32>
    %cst_49 = arith.constant 5.000000e-01 : f32
    %123 = vector.broadcast %cst_49 : f32 to vector<1x128xf32>
    %124 = arith.mulf %123, %122 : vector<1x128xf32>
    %125 = math.tanh %124 : vector<1x128xf32>
    %cst_50 = arith.constant 1.000000e+00 : f32
    %126 = vector.broadcast %cst_50 : f32 to vector<1x128xf32>
    %127 = arith.addf %125, %126 : vector<1x128xf32>
    %cst_51 = arith.constant 5.000000e-01 : f32
    %128 = vector.broadcast %cst_51 : f32 to vector<1x128xf32>
    %129 = arith.mulf %128, %127 : vector<1x128xf32>
    %130 = vector.extract_strided_slice %121 {offsets = [0, 128], sizes = [1, 128], strides = [1, 1]} : vector<1x512xf32> to vector<1x128xf32>
    %cst_52 = arith.constant 5.000000e-01 : f32
    %131 = vector.broadcast %cst_52 : f32 to vector<1x128xf32>
    %132 = arith.mulf %131, %130 : vector<1x128xf32>
    %133 = math.tanh %132 : vector<1x128xf32>
    %cst_53 = arith.constant 1.000000e+00 : f32
    %134 = vector.broadcast %cst_53 : f32 to vector<1x128xf32>
    %135 = arith.addf %133, %134 : vector<1x128xf32>
    %cst_54 = arith.constant 5.000000e-01 : f32
    %136 = vector.broadcast %cst_54 : f32 to vector<1x128xf32>
    %137 = arith.mulf %136, %135 : vector<1x128xf32>
    %138 = vector.extract_strided_slice %121 {offsets = [0, 256], sizes = [1, 128], strides = [1, 1]} : vector<1x512xf32> to vector<1x128xf32>
    %139 = math.tanh %138 : vector<1x128xf32>
    %140 = vector.extract_strided_slice %121 {offsets = [0, 384], sizes = [1, 128], strides = [1, 1]} : vector<1x512xf32> to vector<1x128xf32>
    %cst_55 = arith.constant 5.000000e-01 : f32
    %141 = vector.broadcast %cst_55 : f32 to vector<1x128xf32>
    %142 = arith.mulf %141, %140 : vector<1x128xf32>
    %143 = math.tanh %142 : vector<1x128xf32>
    %cst_56 = arith.constant 1.000000e+00 : f32
    %144 = vector.broadcast %cst_56 : f32 to vector<1x128xf32>
    %145 = arith.addf %143, %144 : vector<1x128xf32>
    %cst_57 = arith.constant 5.000000e-01 : f32
    %146 = vector.broadcast %cst_57 : f32 to vector<1x128xf32>
    %147 = arith.mulf %146, %145 : vector<1x128xf32>
    %148 = arith.mulf %137, %115 : vector<1x128xf32>
    %149 = arith.mulf %129, %139 : vector<1x128xf32>
    %150 = arith.addf %148, %149 : vector<1x128xf32>
    %151 = math.tanh %150 : vector<1x128xf32>
    %152 = arith.mulf %147, %151 : vector<1x128xf32>
    %153 = vector.extract_strided_slice %12 {offsets = [4, 0], sizes = [1, 512], strides = [1, 1]} : vector<8x512xf32> to vector<1x512xf32>
    %c0_58 = arith.constant 0 : index
    %c0_59 = arith.constant 0 : index
    %154 = vector.load %arg2[%c0_58, %c0_59] : memref<128x512xf32, #tpu.memory_space<vmem>>, vector<128x512xf32>
    %cst_60 = arith.constant dense<0.000000e+00> : vector<1x512xf32>
    %155 = tpu.matmul %152, %154, %cst_60 {dimension_numbers = #tpu.dot_dimension_numbers<[1], [0], [0], [1], [0, 0, 1, 1], [], []>} : vector<1x128xf32>, vector<128x512xf32>, vector<1x512xf32> -> vector<1x512xf32>
    %156 = arith.addf %153, %155 : vector<1x512xf32>
    %157 = vector.extract_strided_slice %156 {offsets = [0, 0], sizes = [1, 128], strides = [1, 1]} : vector<1x512xf32> to vector<1x128xf32>
    %cst_61 = arith.constant 5.000000e-01 : f32
    %158 = vector.broadcast %cst_61 : f32 to vector<1x128xf32>
    %159 = arith.mulf %158, %157 : vector<1x128xf32>
    %160 = math.tanh %159 : vector<1x128xf32>
    %cst_62 = arith.constant 1.000000e+00 : f32
    %161 = vector.broadcast %cst_62 : f32 to vector<1x128xf32>
    %162 = arith.addf %160, %161 : vector<1x128xf32>
    %cst_63 = arith.constant 5.000000e-01 : f32
    %163 = vector.broadcast %cst_63 : f32 to vector<1x128xf32>
    %164 = arith.mulf %163, %162 : vector<1x128xf32>
    %165 = vector.extract_strided_slice %156 {offsets = [0, 128], sizes = [1, 128], strides = [1, 1]} : vector<1x512xf32> to vector<1x128xf32>
    %cst_64 = arith.constant 5.000000e-01 : f32
    %166 = vector.broadcast %cst_64 : f32 to vector<1x128xf32>
    %167 = arith.mulf %166, %165 : vector<1x128xf32>
    %168 = math.tanh %167 : vector<1x128xf32>
    %cst_65 = arith.constant 1.000000e+00 : f32
    %169 = vector.broadcast %cst_65 : f32 to vector<1x128xf32>
    %170 = arith.addf %168, %169 : vector<1x128xf32>
    %cst_66 = arith.constant 5.000000e-01 : f32
    %171 = vector.broadcast %cst_66 : f32 to vector<1x128xf32>
    %172 = arith.mulf %171, %170 : vector<1x128xf32>
    %173 = vector.extract_strided_slice %156 {offsets = [0, 256], sizes = [1, 128], strides = [1, 1]} : vector<1x512xf32> to vector<1x128xf32>
    %174 = math.tanh %173 : vector<1x128xf32>
    %175 = vector.extract_strided_slice %156 {offsets = [0, 384], sizes = [1, 128], strides = [1, 1]} : vector<1x512xf32> to vector<1x128xf32>
    %cst_67 = arith.constant 5.000000e-01 : f32
    %176 = vector.broadcast %cst_67 : f32 to vector<1x128xf32>
    %177 = arith.mulf %176, %175 : vector<1x128xf32>
    %178 = math.tanh %177 : vector<1x128xf32>
    %cst_68 = arith.constant 1.000000e+00 : f32
    %179 = vector.broadcast %cst_68 : f32 to vector<1x128xf32>
    %180 = arith.addf %178, %179 : vector<1x128xf32>
    %cst_69 = arith.constant 5.000000e-01 : f32
    %181 = vector.broadcast %cst_69 : f32 to vector<1x128xf32>
    %182 = arith.mulf %181, %180 : vector<1x128xf32>
    %183 = arith.mulf %172, %150 : vector<1x128xf32>
    %184 = arith.mulf %164, %174 : vector<1x128xf32>
    %185 = arith.addf %183, %184 : vector<1x128xf32>
    %186 = math.tanh %185 : vector<1x128xf32>
    %187 = arith.mulf %182, %186 : vector<1x128xf32>
    %188 = vector.extract_strided_slice %12 {offsets = [5, 0], sizes = [1, 512], strides = [1, 1]} : vector<8x512xf32> to vector<1x512xf32>
    %c0_70 = arith.constant 0 : index
    %c0_71 = arith.constant 0 : index
    %189 = vector.load %arg2[%c0_70, %c0_71] : memref<128x512xf32, #tpu.memory_space<vmem>>, vector<128x512xf32>
    %cst_72 = arith.constant dense<0.000000e+00> : vector<1x512xf32>
    %190 = tpu.matmul %187, %189, %cst_72 {dimension_numbers = #tpu.dot_dimension_numbers<[1], [0], [0], [1], [0, 0, 1, 1], [], []>} : vector<1x128xf32>, vector<128x512xf32>, vector<1x512xf32> -> vector<1x512xf32>
    %191 = arith.addf %188, %190 : vector<1x512xf32>
    %192 = vector.extract_strided_slice %191 {offsets = [0, 0], sizes = [1, 128], strides = [1, 1]} : vector<1x512xf32> to vector<1x128xf32>
    %cst_73 = arith.constant 5.000000e-01 : f32
    %193 = vector.broadcast %cst_73 : f32 to vector<1x128xf32>
    %194 = arith.mulf %193, %192 : vector<1x128xf32>
    %195 = math.tanh %194 : vector<1x128xf32>
    %cst_74 = arith.constant 1.000000e+00 : f32
    %196 = vector.broadcast %cst_74 : f32 to vector<1x128xf32>
    %197 = arith.addf %195, %196 : vector<1x128xf32>
    %cst_75 = arith.constant 5.000000e-01 : f32
    %198 = vector.broadcast %cst_75 : f32 to vector<1x128xf32>
    %199 = arith.mulf %198, %197 : vector<1x128xf32>
    %200 = vector.extract_strided_slice %191 {offsets = [0, 128], sizes = [1, 128], strides = [1, 1]} : vector<1x512xf32> to vector<1x128xf32>
    %cst_76 = arith.constant 5.000000e-01 : f32
    %201 = vector.broadcast %cst_76 : f32 to vector<1x128xf32>
    %202 = arith.mulf %201, %200 : vector<1x128xf32>
    %203 = math.tanh %202 : vector<1x128xf32>
    %cst_77 = arith.constant 1.000000e+00 : f32
    %204 = vector.broadcast %cst_77 : f32 to vector<1x128xf32>
    %205 = arith.addf %203, %204 : vector<1x128xf32>
    %cst_78 = arith.constant 5.000000e-01 : f32
    %206 = vector.broadcast %cst_78 : f32 to vector<1x128xf32>
    %207 = arith.mulf %206, %205 : vector<1x128xf32>
    %208 = vector.extract_strided_slice %191 {offsets = [0, 256], sizes = [1, 128], strides = [1, 1]} : vector<1x512xf32> to vector<1x128xf32>
    %209 = math.tanh %208 : vector<1x128xf32>
    %210 = vector.extract_strided_slice %191 {offsets = [0, 384], sizes = [1, 128], strides = [1, 1]} : vector<1x512xf32> to vector<1x128xf32>
    %cst_79 = arith.constant 5.000000e-01 : f32
    %211 = vector.broadcast %cst_79 : f32 to vector<1x128xf32>
    %212 = arith.mulf %211, %210 : vector<1x128xf32>
    %213 = math.tanh %212 : vector<1x128xf32>
    %cst_80 = arith.constant 1.000000e+00 : f32
    %214 = vector.broadcast %cst_80 : f32 to vector<1x128xf32>
    %215 = arith.addf %213, %214 : vector<1x128xf32>
    %cst_81 = arith.constant 5.000000e-01 : f32
    %216 = vector.broadcast %cst_81 : f32 to vector<1x128xf32>
    %217 = arith.mulf %216, %215 : vector<1x128xf32>
    %218 = arith.mulf %207, %185 : vector<1x128xf32>
    %219 = arith.mulf %199, %209 : vector<1x128xf32>
    %220 = arith.addf %218, %219 : vector<1x128xf32>
    %221 = math.tanh %220 : vector<1x128xf32>
    %222 = arith.mulf %217, %221 : vector<1x128xf32>
    %223 = vector.extract_strided_slice %12 {offsets = [6, 0], sizes = [1, 512], strides = [1, 1]} : vector<8x512xf32> to vector<1x512xf32>
    %c0_82 = arith.constant 0 : index
    %c0_83 = arith.constant 0 : index
    %224 = vector.load %arg2[%c0_82, %c0_83] : memref<128x512xf32, #tpu.memory_space<vmem>>, vector<128x512xf32>
    %cst_84 = arith.constant dense<0.000000e+00> : vector<1x512xf32>
    %225 = tpu.matmul %222, %224, %cst_84 {dimension_numbers = #tpu.dot_dimension_numbers<[1], [0], [0], [1], [0, 0, 1, 1], [], []>} : vector<1x128xf32>, vector<128x512xf32>, vector<1x512xf32> -> vector<1x512xf32>
    %226 = arith.addf %223, %225 : vector<1x512xf32>
    %227 = vector.extract_strided_slice %226 {offsets = [0, 0], sizes = [1, 128], strides = [1, 1]} : vector<1x512xf32> to vector<1x128xf32>
    %cst_85 = arith.constant 5.000000e-01 : f32
    %228 = vector.broadcast %cst_85 : f32 to vector<1x128xf32>
    %229 = arith.mulf %228, %227 : vector<1x128xf32>
    %230 = math.tanh %229 : vector<1x128xf32>
    %cst_86 = arith.constant 1.000000e+00 : f32
    %231 = vector.broadcast %cst_86 : f32 to vector<1x128xf32>
    %232 = arith.addf %230, %231 : vector<1x128xf32>
    %cst_87 = arith.constant 5.000000e-01 : f32
    %233 = vector.broadcast %cst_87 : f32 to vector<1x128xf32>
    %234 = arith.mulf %233, %232 : vector<1x128xf32>
    %235 = vector.extract_strided_slice %226 {offsets = [0, 128], sizes = [1, 128], strides = [1, 1]} : vector<1x512xf32> to vector<1x128xf32>
    %cst_88 = arith.constant 5.000000e-01 : f32
    %236 = vector.broadcast %cst_88 : f32 to vector<1x128xf32>
    %237 = arith.mulf %236, %235 : vector<1x128xf32>
    %238 = math.tanh %237 : vector<1x128xf32>
    %cst_89 = arith.constant 1.000000e+00 : f32
    %239 = vector.broadcast %cst_89 : f32 to vector<1x128xf32>
    %240 = arith.addf %238, %239 : vector<1x128xf32>
    %cst_90 = arith.constant 5.000000e-01 : f32
    %241 = vector.broadcast %cst_90 : f32 to vector<1x128xf32>
    %242 = arith.mulf %241, %240 : vector<1x128xf32>
    %243 = vector.extract_strided_slice %226 {offsets = [0, 256], sizes = [1, 128], strides = [1, 1]} : vector<1x512xf32> to vector<1x128xf32>
    %244 = math.tanh %243 : vector<1x128xf32>
    %245 = vector.extract_strided_slice %226 {offsets = [0, 384], sizes = [1, 128], strides = [1, 1]} : vector<1x512xf32> to vector<1x128xf32>
    %cst_91 = arith.constant 5.000000e-01 : f32
    %246 = vector.broadcast %cst_91 : f32 to vector<1x128xf32>
    %247 = arith.mulf %246, %245 : vector<1x128xf32>
    %248 = math.tanh %247 : vector<1x128xf32>
    %cst_92 = arith.constant 1.000000e+00 : f32
    %249 = vector.broadcast %cst_92 : f32 to vector<1x128xf32>
    %250 = arith.addf %248, %249 : vector<1x128xf32>
    %cst_93 = arith.constant 5.000000e-01 : f32
    %251 = vector.broadcast %cst_93 : f32 to vector<1x128xf32>
    %252 = arith.mulf %251, %250 : vector<1x128xf32>
    %253 = arith.mulf %242, %220 : vector<1x128xf32>
    %254 = arith.mulf %234, %244 : vector<1x128xf32>
    %255 = arith.addf %253, %254 : vector<1x128xf32>
    %256 = math.tanh %255 : vector<1x128xf32>
    %257 = arith.mulf %252, %256 : vector<1x128xf32>
    %258 = vector.extract_strided_slice %12 {offsets = [7, 0], sizes = [1, 512], strides = [1, 1]} : vector<8x512xf32> to vector<1x512xf32>
    %c0_94 = arith.constant 0 : index
    %c0_95 = arith.constant 0 : index
    %259 = vector.load %arg2[%c0_94, %c0_95] : memref<128x512xf32, #tpu.memory_space<vmem>>, vector<128x512xf32>
    %cst_96 = arith.constant dense<0.000000e+00> : vector<1x512xf32>
    %260 = tpu.matmul %257, %259, %cst_96 {dimension_numbers = #tpu.dot_dimension_numbers<[1], [0], [0], [1], [0, 0, 1, 1], [], []>} : vector<1x128xf32>, vector<128x512xf32>, vector<1x512xf32> -> vector<1x512xf32>
    %261 = arith.addf %258, %260 : vector<1x512xf32>
    %262 = vector.extract_strided_slice %261 {offsets = [0, 0], sizes = [1, 128], strides = [1, 1]} : vector<1x512xf32> to vector<1x128xf32>
    %cst_97 = arith.constant 5.000000e-01 : f32
    %263 = vector.broadcast %cst_97 : f32 to vector<1x128xf32>
    %264 = arith.mulf %263, %262 : vector<1x128xf32>
    %265 = math.tanh %264 : vector<1x128xf32>
    %cst_98 = arith.constant 1.000000e+00 : f32
    %266 = vector.broadcast %cst_98 : f32 to vector<1x128xf32>
    %267 = arith.addf %265, %266 : vector<1x128xf32>
    %cst_99 = arith.constant 5.000000e-01 : f32
    %268 = vector.broadcast %cst_99 : f32 to vector<1x128xf32>
    %269 = arith.mulf %268, %267 : vector<1x128xf32>
    %270 = vector.extract_strided_slice %261 {offsets = [0, 128], sizes = [1, 128], strides = [1, 1]} : vector<1x512xf32> to vector<1x128xf32>
    %cst_100 = arith.constant 5.000000e-01 : f32
    %271 = vector.broadcast %cst_100 : f32 to vector<1x128xf32>
    %272 = arith.mulf %271, %270 : vector<1x128xf32>
    %273 = math.tanh %272 : vector<1x128xf32>
    %cst_101 = arith.constant 1.000000e+00 : f32
    %274 = vector.broadcast %cst_101 : f32 to vector<1x128xf32>
    %275 = arith.addf %273, %274 : vector<1x128xf32>
    %cst_102 = arith.constant 5.000000e-01 : f32
    %276 = vector.broadcast %cst_102 : f32 to vector<1x128xf32>
    %277 = arith.mulf %276, %275 : vector<1x128xf32>
    %278 = vector.extract_strided_slice %261 {offsets = [0, 256], sizes = [1, 128], strides = [1, 1]} : vector<1x512xf32> to vector<1x128xf32>
    %279 = math.tanh %278 : vector<1x128xf32>
    %280 = vector.extract_strided_slice %261 {offsets = [0, 384], sizes = [1, 128], strides = [1, 1]} : vector<1x512xf32> to vector<1x128xf32>
    %cst_103 = arith.constant 5.000000e-01 : f32
    %281 = vector.broadcast %cst_103 : f32 to vector<1x128xf32>
    %282 = arith.mulf %281, %280 : vector<1x128xf32>
    %283 = math.tanh %282 : vector<1x128xf32>
    %cst_104 = arith.constant 1.000000e+00 : f32
    %284 = vector.broadcast %cst_104 : f32 to vector<1x128xf32>
    %285 = arith.addf %283, %284 : vector<1x128xf32>
    %cst_105 = arith.constant 5.000000e-01 : f32
    %286 = vector.broadcast %cst_105 : f32 to vector<1x128xf32>
    %287 = arith.mulf %286, %285 : vector<1x128xf32>
    %288 = arith.mulf %277, %255 : vector<1x128xf32>
    %289 = arith.mulf %269, %279 : vector<1x128xf32>
    %290 = arith.addf %288, %289 : vector<1x128xf32>
    %291 = math.tanh %290 : vector<1x128xf32>
    %292 = arith.mulf %287, %291 : vector<1x128xf32>
    %293 = tpu.concatenate %47, %82, %117, %152, %187, %222, %257, %292 in 0 : vector<1x128xf32>, vector<1x128xf32>, vector<1x128xf32>, vector<1x128xf32>, vector<1x128xf32>, vector<1x128xf32>, vector<1x128xf32>, vector<1x128xf32> -> vector<8x128xf32>
    %c0_106 = arith.constant 0 : index
    %c0_107 = arith.constant 0 : index
    %294 = vector.load %arg4[%c0_106, %c0_107] : memref<128x128xf32, #tpu.memory_space<vmem>>, vector<128x128xf32>
    %cst_108 = arith.constant dense<0.000000e+00> : vector<8x128xf32>
    %295 = tpu.matmul %293, %294, %cst_108 {dimension_numbers = #tpu.dot_dimension_numbers<[1], [0], [0], [1], [0, 0, 1, 1], [], []>} : vector<8x128xf32>, vector<128x128xf32>, vector<8x128xf32> -> vector<8x128xf32>
    %c0_109 = arith.constant 0 : index
    %c0_110 = arith.constant 0 : index
    %296 = vector.load %arg5[%c0_109, %c0_110] : memref<1x128xf32, #tpu.memory_space<vmem>>, vector<1x128xf32>
    %297 = vector.broadcast %296 : vector<1x128xf32> to vector<8x128xf32>
    %298 = arith.addf %295, %297 : vector<8x128xf32>
    %299 = arith.index_cast %10 : i32 to index
    %c0_111 = arith.constant 0 : index
    %300 = vector.load %arg6[%299, %c0_111] : memref<8x128xf32, #tpu.memory_space<vmem>>, vector<8x128xf32>
    tpu.vector_store %arg6[%299, %c0_111], %298 {strides = array<i32>} : memref<8x128xf32, #tpu.memory_space<vmem>>, vector<8x128xf32>,
    %c1_i32 = arith.constant 1 : i32
    return
  }
}

</mosaic_0001>

<bundles_post_ra>
// kernel: rnn_model4_forward.1
= control target key start
LH: loop header
LB: loop body
LE: loop exit
PB: predicated region body
PF: predicated region fallthrough
CT: control target
= control target key end

     0   :  { %v3434_v3 = vmov 0.0   ;;  %vm54_vm0 = vcmask 130048   ;;  %vm1710_vm1 = vcmask 1040384   ;;  %vm1712_vm2 = vcmask 1041408   ;;  %s3427_s1 = inlined_call_operand.vmem [shape: f32[16,512], index: 1, kind: input, shape index: {}]   ;;  %s3428_s2 = inlined_call_operand.vmem [shape: f32[128,512], index: 2, kind: input, shape index: {}]   ;;  %s3429_s0 = inlined_call_operand.vmem [shape: f32[8,16], index: 0, kind: input, shape index: {}]   ;;  %s3430_s3 = inlined_call_operand.vmem [shape: f32[1,512], index: 3, kind: input, shape index: {}]   ;;  %s3431_s4 = inlined_call_operand.vmem [shape: f32[128,128], index: 4, kind: input, shape index: {}]   ;;  %s3432_s5 = inlined_call_operand.vmem [shape: f32[1,128], index: 5, kind: input, shape index: {}]   ;;  %s3433_s6 = inlined_call_operand.vmem [shape: f32[8,128], index: 6, kind: output, shape index: {}]  }
   0x1   :  { %v29_v0 = vld [vmem:[%s3427_s1 + $0x28] sm:$0xff]  ;;  %v28_v2 = vld [vmem:[%s3427_s1 + $0x20] sm:$0xff]  ;;  %122 = vmatprep.mubr.f32.mxu1 %v3434_v3  ;;  %339 = vmatprep.mubr.f32.mxu0 %v3434_v3  ;;  %v31_v10 = vld [vmem:[%s3427_s1 + $0x38] sm:$0xff]  ;;  %vm1714_vm3 = vcmask 1042432   ;;  %vm1716_vm4 = vcmask 1043456   ;;  %vm1718_vm5 = vcmask 1044480  }
   0x2   :  { %v2066_v1 = vld [vmem:[%s3428_s2 + $0x1e8] sm:$0xff]  ;;  %86 = vmatprep.subr.mxu1 %v29_v0  ;;  %v2077_v4 = vld [vmem:[%s3428_s2 + $0x1e0] sm:$0xff]  ;;  %v30_v12 = vld [vmem:[%s3427_s1 + $0x30] sm:$0xff]  ;;  %vm1720_vm6 = vcmask 1045504   ;;  %vm2024_vm7 = vmmov 0   ;;  %vm1722_vm8 = vcmask 1046528  }
   0x3   :  { %3528 = vst [vmem:[#allocation3_spill] sm:$0xff] %v2066_v1  ;;  %275 = vmatprep.subr.mxu0 %v2066_v1  ;;  %v25_v5 = vld [vmem:[%s3427_s1 + $0x8] sm:$0xff]  ;;  %87 = vmatpush1.msra.mxu1 %v28_v2  ;;  %v24_v7 = vld [vmem:[%s3427_s1] sm:$0xff]  ;;  %v27_v14 = vld [vmem:[%s3427_s1 + $0x18] sm:$0xff] }
   0x4   :  { %v2085_v6 = vld [vmem:[%s3428_s2 + $0x1c8] sm:$0xff]  ;;  %276 = vmatpush1.msra.mxu0 %v2077_v4  ;;  %v2094_v8 = vld [vmem:[%s3428_s2 + $0x1c0] sm:$0xff]  ;;  %88 = vmatprep.subr.mxu1 %v25_v5  ;;  %v26_v16 = vld [vmem:[%s3427_s1 + $0x10] sm:$0xff] }
   0x5   :  { %3529 = vst [vmem:[#allocation4_spill] sm:$0xff] %v2085_v6  ;;  %v23_v9 = vld [vmem:[%s3429_s0] sm:$0xff]  ;;  %277 = vmatprep.subr.mxu0 %v2085_v6  ;;  %v2106_v11 = vld [vmem:[%s3428_s2 + $0x1a8] sm:$0xff]  ;;  %89 = vmatpush1.msra.mxu1 %v24_v7  ;;  %v2145_v19 = vld [vmem:[%s3428_s2 + $0x1f8] sm:$0xff] }
   0x6   :  { %278 = vmatpush1.msra.mxu0 %v2094_v8  ;;  %v2115_v13 = vld [vmem:[%s3428_s2 + $0x1a0] sm:$0xff]  ;;  %1822 = vmatmul.mubr.msk.f32.vlgmr.msra.gmra.mxu1 %vm54_vm0, %v23_v9  ;;  %v2124_v15 = vld [vmem:[%s3428_s2 + $0x188] sm:$0xff]  ;;  %3530 = vst [vmem:[#allocation5_spill] sm:$0xff] %v2145_v19  ;;  %v2157_v21 = vld [vmem:[%s3428_s2 + $0x1f0] sm:$0xff] }
   0x7   :  { %157 = vmatprep.subr.mxu1 %v31_v10  ;;  %279 = vmatprep.subr.mxu0 %v2106_v11  ;;  %v2133_v17 = vld [vmem:[%s3428_s2 + $0x180] sm:$0xff]  ;;  %v2139_v18 = vld [vmem:[%s3428_s2 + $0x168] sm:$0xff]  ;;  %v2169_v23 = vld [vmem:[%s3428_s2 + $0x1d8] sm:$0xff] }
   0x8   :  { %158 = vmatpush1.msra.mxu1 %v30_v12  ;;  %280 = vmatpush1.msra.mxu0 %v2115_v13  ;;  %v2150_v20 = vld [vmem:[%s3428_s2 + $0x160] sm:$0xff]  ;;  %v2162_v22 = vld [vmem:[%s3428_s2 + $0x148] sm:$0xff]  ;;  %v2181_v25 = vld [vmem:[%s3428_s2 + $0x1d0] sm:$0xff] }
   0x9   :  { %159 = vmatprep.subr.mxu1 %v27_v14  ;;  %281 = vmatprep.subr.mxu0 %v2124_v15  ;;  %v2174_v24 = vld [vmem:[%s3428_s2 + $0x140] sm:$0xff]  ;;  %v2186_v26 = vld [vmem:[%s3428_s2 + $0x128] sm:$0xff]  ;;  %v2193_v27 = vld [vmem:[%s3428_s2 + $0x1b8] sm:$0xff] }
   0xa   :  { %160 = vmatpush1.msra.mxu1 %v26_v16  ;;  %193 = vmatprep.mubr.f32.mxu1 %v3434_v3  ;;  %v2198_v28 = vld [vmem:[%s3428_s2 + $0x120] sm:$0xff]  ;;  %v2205_v29 = vld [vmem:[%s3428_s2 + $0x1b0] sm:$0xff]  ;;  %v2210_v30 = vld [vmem:[%s3428_s2 + $0x108] sm:$0xff] }
   0xb   :  { %282 = vmatpush1.msra.mxu0 %v2133_v17  ;;  %1823 = vmatmul.mubr.msk.f32.vlgmr.msra.gmra.mxu1 %vm54_vm0, %v23_v9  ;;  %v2217_v31 = vld [vmem:[%s3428_s2 + $0x198] sm:$0xff]  ;;  %v2222_v32 = vld [vmem:[%s3428_s2 + $0x100] sm:$0xff]  ;;  %v2229_v33 = vld [vmem:[%s3428_s2 + $0x190] sm:$0xff] }
   0xc   :  { %283 = vmatprep.subr.mxu0 %v2139_v18  ;;  %346 = vmatprep.subr.mxu1 %v2145_v19  ;;  %v2234_v34 = vld [vmem:[%s3428_s2 + $0xe8] sm:$0xff]  ;;  %v2241_v35 = vld [vmem:[%s3428_s2 + $0x178] sm:$0xff]  ;;  %v2246_v36 = vld [vmem:[%s3428_s2 + $0xe0] sm:$0xff] }
   0xd   :  { %284 = vmatpush1.msra.mxu0 %v2150_v20  ;;  %347 = vmatpush1.msra.mxu1 %v2157_v21  ;;  %v2253_v37 = vld [vmem:[%s3428_s2 + $0x170] sm:$0xff]  ;;  %v2258_v38 = vld [vmem:[%s3428_s2 + $0xc8] sm:$0xff]  ;;  %v2265_v39 = vld [vmem:[%s3428_s2 + $0x158] sm:$0xff] }
   0xe   :  { %285 = vmatprep.subr.mxu0 %v2162_v22  ;;  %348 = vmatprep.subr.mxu1 %v2169_v23  ;;  %v2270_v40 = vld [vmem:[%s3428_s2 + $0xc0] sm:$0xff]  ;;  %v2277_v41 = vld [vmem:[%s3428_s2 + $0x150] sm:$0xff]  ;;  %v2282_v42 = vld [vmem:[%s3428_s2 + $0xa8] sm:$0xff] }
   0xf   :  { %286 = vmatpush1.msra.mxu0 %v2174_v24  ;;  %349 = vmatpush1.msra.mxu1 %v2181_v25  ;;  %v2289_v43 = vld [vmem:[%s3428_s2 + $0x138] sm:$0xff]  ;;  %v2294_v44 = vld [vmem:[%s3428_s2 + $0xa0] sm:$0xff]  ;;  %v2301_v45 = vld [vmem:[%s3428_s2 + $0x130] sm:$0xff] }
  0x10   :  { %287 = vmatprep.subr.mxu0 %v2186_v26  ;;  %350 = vmatprep.subr.mxu1 %v2193_v27  ;;  %v2306_v46 = vld [vmem:[%s3428_s2 + $0x88] sm:$0xff]  ;;  %v2313_v47 = vld [vmem:[%s3428_s2 + $0x118] sm:$0xff]  ;;  %v2318_v48 = vld [vmem:[%s3428_s2 + $0x80] sm:$0xff] }
  0x11   :  { %288 = vmatpush1.msra.mxu0 %v2198_v28  ;;  %351 = vmatpush1.msra.mxu1 %v2205_v29  ;;  %3531 = vst [vmem:[#allocation6_spill] sm:$0xff] %v2306_v46  ;;  %3532 = vst [vmem:[#allocation7_spill] sm:$0xff] %v2318_v48  ;;  %v2325_v49 = vld [vmem:[%s3428_s2 + $0x110] sm:$0xff]  ;;  %v2330_v50 = vld [vmem:[%s3428_s2 + $0x68] sm:$0xff] }
  0x12   :  { %289 = vmatprep.subr.mxu0 %v2210_v30  ;;  %352 = vmatprep.subr.mxu1 %v2217_v31  ;;  %3533 = vst [vmem:[#allocation8_spill] sm:$0xff] %v2330_v50  ;;  %v2337_v51 = vld [vmem:[%s3428_s2 + $0xf8] sm:$0xff]  ;;  %v2342_v52 = vld [vmem:[%s3428_s2 + $0x60] sm:$0xff]  ;;  %v2349_v53 = vld [vmem:[%s3428_s2 + $0xf0] sm:$0xff] }
  0x13   :  { %290 = vmatpush1.msra.mxu0 %v2222_v32  ;;  %353 = vmatpush1.msra.mxu1 %v2229_v33  ;;  %3534 = vst [vmem:[#allocation9_spill] sm:$0xff] %v2342_v52  ;;  %v2354_v54 = vld [vmem:[%s3428_s2 + $0x48] sm:$0xff]  ;;  %v2361_v55 = vld [vmem:[%s3428_s2 + $0xd8] sm:$0xff]  ;;  %v2366_v56 = vld [vmem:[%s3428_s2 + $0x40] sm:$0xff] }
  0x14   :  { %291 = vmatprep.subr.mxu0 %v2234_v34  ;;  %354 = vmatprep.subr.mxu1 %v2241_v35  ;;  %3535 = vst [vmem:[#allocation10_spill] sm:$0xff] %v2354_v54  ;;  %3536 = vst [vmem:[#allocation11_spill] sm:$0xff] %v2366_v56  ;;  %v2373_v57 = vld [vmem:[%s3428_s2 + $0xd0] sm:$0xff]  ;;  %v2378_v58 = vld [vmem:[%s3428_s2 + $0x28] sm:$0xff] }
  0x15   :  { %292 = vmatpush1.msra.mxu0 %v2246_v36  ;;  %355 = vmatpush1.msra.mxu1 %v2253_v37  ;;  %3537 = vst [vmem:[#allocation12_spill] sm:$0xff] %v2378_v58  ;;  %v2385_v59 = vld [vmem:[%s3428_s2 + $0xb8] sm:$0xff]  ;;  %v2390_v60 = vld [vmem:[%s3428_s2 + $0x20] sm:$0xff]  ;;  %v2397_v61 = vld [vmem:[%s3428_s2 + $0xb0] sm:$0xff] }
  0x16   :  { %293 = vmatprep.subr.mxu0 %v2258_v38  ;;  %356 = vmatprep.subr.mxu1 %v2265_v39  ;;  %3538 = vst [vmem:[#allocation13_spill] sm:$0xff] %v2390_v60  ;;  %3539 = vst [vmem:[#allocation14_spill] sm:$0xff] %v2397_v61  ;;  %v2402_v62 = vld [vmem:[%s3428_s2 + $0x8] sm:$0xff]  ;;  %v2409_v63 = vld [vmem:[%s3428_s2 + $0x98] sm:$0xff] }
  0x17   :  { %294 = vmatpush1.msra.mxu0 %v2270_v40  ;;  %357 = vmatpush1.msra.mxu1 %v2277_v41  ;;  %3540 = vst [vmem:[#allocation15_spill] sm:$0xff] %v2402_v62  ;;  %3541 = vst [vmem:[#allocation16_spill] sm:$0xff] %v2409_v63  ;;  %v2414_v0 = vld [vmem:[%s3428_s2] sm:$0xff]  ;;  %v2421_v2 = vld [vmem:[%s3428_s2 + $0x90] sm:$0xff] }
  0x18   :  { %295 = vmatprep.subr.mxu0 %v2282_v42  ;;  %358 = vmatprep.subr.mxu1 %v2289_v43  ;;  %3542 = vst [vmem:[#allocation17_spill] sm:$0xff] %v2414_v0  ;;  %3543 = vst [vmem:[#allocation18_spill] sm:$0xff] %v2421_v2  ;;  %v2428_v5 = vld [vmem:[%s3428_s2 + $0x78] sm:$0xff]  ;;  %v2435_v7 = vld [vmem:[%s3428_s2 + $0x70] sm:$0xff] }
  0x19   :  { %296 = vmatpush1.msra.mxu0 %v2294_v44  ;;  %359 = vmatpush1.msra.mxu1 %v2301_v45  ;;  %3544 = vst [vmem:[#allocation19_spill] sm:$0xff] %v2428_v5  ;;  %3545 = vst [vmem:[#allocation20_spill] sm:$0xff] %v2435_v7  ;;  %v2442_v9 = vld [vmem:[%s3428_s2 + $0x58] sm:$0xff]  ;;  %v2448_v10 = vld [vmem:[%s3428_s2 + $0x50] sm:$0xff] }
  0x1a   :  { %297 = vmatprep.subr.mxu0 %v2306_v46  ;;  %360 = vmatprep.subr.mxu1 %v2313_v47  ;;  %3546 = vst [vmem:[#allocation21_spill] sm:$0xff] %v2442_v9  ;;  %3547 = vst [vmem:[#allocation22_spill] sm:$0xff] %v2448_v10  ;;  %v2455_v12 = vld [vmem:[%s3428_s2 + $0x38] sm:$0xff]  ;;  %v2462_v14 = vld [vmem:[%s3428_s2 + $0x30] sm:$0xff] }
  0x1b   :  { %298 = vmatpush1.msra.mxu0 %v2318_v48  ;;  %361 = vmatpush1.msra.mxu1 %v2325_v49  ;;  %3548 = vst [vmem:[#allocation23_spill] sm:$0xff] %v2455_v12  ;;  %3549 = vst [vmem:[#allocation24_spill] sm:$0xff] %v2462_v14  ;;  %v2469_v16 = vld [vmem:[%s3428_s2 + $0x18] sm:$0xff] }
  0x1c   :  { %299 = vmatprep.subr.mxu0 %v2330_v50  ;;  %362 = vmatprep.subr.mxu1 %v2337_v51  ;;  %3550 = vst [vmem:[#allocation25_spill] sm:$0xff] %v2469_v16 }
  0x1d   :  { %300 = vmatpush1.msra.mxu0 %v2342_v52  ;;  %363 = vmatpush1.msra.mxu1 %v2349_v53 }
  0x1e   :  { %301 = vmatprep.subr.mxu0 %v2354_v54  ;;  %364 = vmatprep.subr.mxu1 %v2361_v55 }
  0x1f   :  { %302 = vmatpush1.msra.mxu0 %v2366_v56  ;;  %365 = vmatpush1.msra.mxu1 %v2373_v57 }
  0x20   :  { %303 = vmatprep.subr.mxu0 %v2378_v58  ;;  %366 = vmatprep.subr.mxu1 %v2385_v59 }
  0x21   :  { %304 = vmatpush1.msra.mxu0 %v2390_v60  ;;  %367 = vmatpush1.msra.mxu1 %v2397_v61 }
  0x22   :  { %305 = vmatprep.subr.mxu0 %v2402_v62  ;;  %368 = vmatprep.subr.mxu1 %v2409_v63 }
  0x23   :  { %306 = vmatpush1.msra.mxu0 %v2414_v0  ;;  %369 = vmatpush1.msra.mxu1 %v2421_v2 }
  0x24   :  { %340 = vmatmul.mubr.f32.vlgmr.msra.gmra.mxu0 %v3434_v3  ;;  %370 = vmatprep.subr.mxu1 %v2428_v5 }
  0x25   :  { %410 = vmatprep.mubr.f32.mxu1 %v3434_v3  ;;  %371 = vmatpush1.msra.mxu1 %v2435_v7  ;;  %v2476_v3 = vld [vmem:[%s3428_s2 + $0x10] sm:$0xff] }
  0x26   :  { %439 = vmatprep.subr.mxu0 %v2066_v1  ;;  %372 = vmatprep.subr.mxu1 %v2442_v9  ;;  %3551 = vst [vmem:[#allocation26_spill] sm:$0xff] %v2476_v3 }
  0x27   :  { %440 = vmatpush1.msra.mxu0 %v2077_v4  ;;  %373 = vmatpush1.msra.mxu1 %v2448_v10 }
  0x28   :  { %441 = vmatprep.subr.mxu0 %v2085_v6  ;;  %374 = vmatprep.subr.mxu1 %v2455_v12  ;;  %v3552_v6 = vmov 0.0  }
  0x29   :  { %442 = vmatpush1.msra.mxu0 %v2094_v8  ;;  %375 = vmatpush1.msra.mxu1 %v2462_v14 }
  0x2a   :  { %443 = vmatprep.subr.mxu0 %v2106_v11  ;;  %376 = vmatprep.subr.mxu1 %v2469_v16 }
  0x2b   :  { %444 = vmatpush1.msra.mxu0 %v2115_v13  ;;  %377 = vmatpush1.msra.mxu1 %v2476_v3 }
  0x2c   :  { %445 = vmatprep.subr.mxu0 %v2124_v15  ;;  %411 = vmatmul.mubr.f32.vlgmr.msra.gmra.mxu1 %v3552_v6 }
  0x2d   :  { %510 = vmatprep.subr.mxu1 %v2145_v19  ;;  %446 = vmatpush1.msra.mxu0 %v2133_v17 }
  0x2e   :  { %511 = vmatpush1.msra.mxu1 %v2157_v21  ;;  %447 = vmatprep.subr.mxu0 %v2139_v18 }
  0x2f   :  { %512 = vmatprep.subr.mxu1 %v2169_v23  ;;  %448 = vmatpush1.msra.mxu0 %v2150_v20 }
  0x30   :  { %513 = vmatpush1.msra.mxu1 %v2181_v25  ;;  %449 = vmatprep.subr.mxu0 %v2162_v22 }
  0x31   :  { %514 = vmatprep.subr.mxu1 %v2193_v27  ;;  %450 = vmatpush1.msra.mxu0 %v2174_v24 }
  0x32   :  { %515 = vmatpush1.msra.mxu1 %v2205_v29  ;;  %451 = vmatprep.subr.mxu0 %v2186_v26 }
  0x33   :  { %516 = vmatprep.subr.mxu1 %v2217_v31  ;;  %452 = vmatpush1.msra.mxu0 %v2198_v28 }
  0x34   :  { %517 = vmatpush1.msra.mxu1 %v2229_v33  ;;  %453 = vmatprep.subr.mxu0 %v2210_v30 }
  0x35   :  { %518 = vmatprep.subr.mxu1 %v2241_v35  ;;  %454 = vmatpush1.msra.mxu0 %v2222_v32 }
  0x36   :  { %519 = vmatpush1.msra.mxu1 %v2253_v37  ;;  %455 = vmatprep.subr.mxu0 %v2234_v34 }
  0x37   :  { %520 = vmatprep.subr.mxu1 %v2265_v39  ;;  %456 = vmatpush1.msra.mxu0 %v2246_v36 }
  0x38   :  { %521 = vmatpush1.msra.mxu1 %v2277_v41  ;;  %457 = vmatprep.subr.mxu0 %v2258_v38 }
  0x39   :  { %522 = vmatprep.subr.mxu1 %v2289_v43  ;;  %458 = vmatpush1.msra.mxu0 %v2270_v40 }
  0x3a   :  { %523 = vmatpush1.msra.mxu1 %v2301_v45  ;;  %459 = vmatprep.subr.mxu0 %v2282_v42 }
  0x3b   :  { %524 = vmatprep.subr.mxu1 %v2313_v47  ;;  %460 = vmatpush1.msra.mxu0 %v2294_v44 }
  0x3c   :  { %525 = vmatpush1.msra.mxu1 %v2325_v49  ;;  %461 = vmatprep.subr.mxu0 %v2306_v46 }
  0x3d   :  { %526 = vmatprep.subr.mxu1 %v2337_v51  ;;  %462 = vmatpush1.msra.mxu0 %v2318_v48 }
  0x3e   :  { %527 = vmatpush1.msra.mxu1 %v2349_v53  ;;  %463 = vmatprep.subr.mxu0 %v2330_v50 }
  0x3f   :  { %528 = vmatprep.subr.mxu1 %v2361_v55  ;;  %464 = vmatpush1.msra.mxu0 %v2342_v52 }
  0x40   :  { %529 = vmatpush1.msra.mxu1 %v2373_v57  ;;  %465 = vmatprep.subr.mxu0 %v2354_v54 }
  0x41   :  { %530 = vmatprep.subr.mxu1 %v2385_v59  ;;  %466 = vmatpush1.msra.mxu0 %v2366_v56 }
  0x42   :  { %531 = vmatpush1.msra.mxu1 %v2397_v61  ;;  %467 = vmatprep.subr.mxu0 %v2378_v58  ;;  %v32_v58 = vld [vmem:[%s3430_s3] sm:$0xf] }
  0x43   :  { %532 = vmatprep.subr.mxu1 %v2409_v63  ;;  %468 = vmatpush1.msra.mxu0 %v2390_v60 }
  0x44   :  { %533 = vmatpush1.msra.mxu1 %v2421_v2  ;;  %469 = vmatprep.subr.mxu0 %v2402_v62 }
  0x45   :  { %534 = vmatprep.subr.mxu1 %v2428_v5  ;;  %470 = vmatpush1.msra.mxu0 %v2414_v0  ;;  %v34_v0 = vlaneseq }
  0x46   :  { %535 = vmatpush1.msra.mxu1 %v2435_v7  ;;  %503 = vmatprep.mubr.f32.mxu0 %v3552_v6 }
  0x47   :  { %536 = vmatprep.subr.mxu1 %v2442_v9  ;;  %574 = vmatprep.mubr.f32.mxu1 %v3552_v6  ;;  %v35_v62 = vshrl.u32 %v34_v0, 7 }
  0x48   :  { %537 = vmatpush1.msra.mxu1 %v2448_v10  ;;  %621 = vmatprep.subr.mxu0 %v2066_v1 }
  0x49   :  { %538 = vmatprep.subr.mxu1 %v2455_v12  ;;  %v36_v60 = vsub.s32 0, %v35_v62  ;;  %v40_v6 = vsub.s32 1, %v35_v62  ;;  %v48_v50 = vsub.s32 3, %v35_v62 }
  0x4a   :  { %539 = vmatpush1.msra.mxu1 %v2462_v14  ;;  %v44_v14 = vsub.s32 2, %v35_v62 }
  0x4b   :  { %540 = vmatprep.subr.mxu1 %v2469_v16  ;;  %v37_v12 = vrot.slane %v32_v58, %v36_v60  ;;  %v41_v56 = vrot.slane %v32_v58, %v40_v6 }
  0x4c   :  { %541 = vmatpush1.msra.mxu1 %v2476_v3  ;;  %v45_v5 = vrot.slane %v32_v58, %v44_v14 }
  0x4d   :  { %692 = vmatprep.subr.mxu1 %v2145_v19 }
  0xc6   :  { %v124_v10 = vpop.f32.mrf.mxu1 }
  0xc7   :  { %v2550_v9 = vadd.f32 %v124_v10, %v37_v12  ;;  %v49_v10 = vrot.slane %v32_v58, %v48_v50 }
  0xc8   :  { %v126_v1 = vpop.f32.mrf.mxu1 }
  0xc9   :  { %v2552_v54 = vadd.f32 %v126_v1, %v41_v56 }
  0xcb   :  { %3553 = vst [vmem:[#allocation27_spill] sm:$0xff] %v2552_v54  ;;  %v195_v0 = vpop.f32.mrf.mxu1 }
  0xcc   :  { %v2556_v6 = vadd.f32 %v195_v0, %v45_v5 }
  0xcd   :  { %v197_v60 = vpop.f32.mrf.mxu1 }
  0xce   :  { %v2559_v48 = vadd.f32 %v197_v60, %v49_v10 }
  0xe4   :  { %v341_v16 = vpop.f32.mrf.mxu0 }
  0xe5   :  { %v417_v19 = vadd.f32 %v341_v16, %v2550_v9 }
  0xe6   :  { %v343_v3 = vpop.f32.mrf.mxu0 }
  0xe7   :  { %v421_v7 = vmul.f32 0.5, %v417_v19  ;;  %v418_v52 = vadd.f32 %v343_v3, %v2552_v54 }
  0xe9   :  { %1879 = vtanh.f32 %v421_v7  ;;  %v425_v2 = vmul.f32 0.5, %v418_v52 }
  0xeb   :  { %1881 = vtanh.f32 %v425_v2 }
  0xec   :  { %v412_v12 = vpop.f32.mrf.mxu1 }
  0xed   :  { %v419_v1 = vadd.f32 %v412_v12, %v2556_v6 }
  0xee   :  { %v414_v56 = vpop.f32.mrf.mxu1 }
  0xef   :  { %1883 = vtanh.f32 %v419_v1  ;;  %v420_v19 = vadd.f32 %v414_v56, %v2559_v48 }
  0xf1   :  { %v430_v3 = vmul.f32 0.5, %v420_v19  ;;  %v3555_v19 = vld [vmem:[#allocation4_spill] sm:$0xff] }
  0xf3   :  { %1885 = vtanh.f32 %v430_v3  ;;  %v3557_v3 = vld [vmem:[#allocation18_spill] sm:$0xff] }
  0xf6   :  { %v1880_v16 = vpop.eup %1879 }
  0xf7   :  { %v423_v62 = vadd.f32 1.0, %v1880_v16  ;;  %v3556_v16 = vld [vmem:[#allocation7_spill] sm:$0xff] }
  0xf8   :  { %v1882_v14 = vpop.eup %1881 }
  0xf9   :  { %v427_v7 = vadd.f32 1.0, %v1882_v14  ;;  %v424_v2 = vmul.f32 0.5, %v423_v62  ;;  %v3558_v14 = vld [vmem:[#allocation8_spill] sm:$0xff]  ;;  %v3559_v62 = vld [vmem:[#allocation19_spill] sm:$0xff] }
  0xfb   :  { %v428_v52 = vmul.f32 0.5, %v427_v7  ;;  %v3560_v7 = vld [vmem:[#allocation9_spill] sm:$0xff] }
  0xfc   :  { %v1884_v5 = vpop.eup %1883 }
  0xfd   :  { %v434_v0 = vmul.f32 0.0, %v428_v52  ;;  %v435_v50 = vmul.f32 %v1884_v5, %v424_v2  ;;  %v3561_v52 = vld [vmem:[#allocation20_spill] sm:$0xff]  ;;  %v3562_v2 = vld [vmem:[#allocation10_spill] sm:$0xff]  ;;  %v3563_v5 = vld [vmem:[#allocation21_spill] sm:$0xff] }
  0xff   :  { %v2562_v58 = vadd.f32 %v435_v50, %v434_v0  ;;  %v3564_v0 = vld [vmem:[#allocation11_spill] sm:$0xff]  ;;  %v3565_v50 = vld [vmem:[#allocation22_spill] sm:$0xff] }
 0x100   :  { %v1886_v60 = vpop.eup %1885 }
 0x101   :  { %1887 = vtanh.f32 %v2562_v58  ;;  %v432_v10 = vadd.f32 1.0, %v1886_v60  ;;  %v3566_v60 = vld [vmem:[#allocation12_spill] sm:$0xff] }
 0x103   :  { %v433_v12 = vmul.f32 0.5, %v432_v10  ;;  %v3567_v10 = vld [vmem:[#allocation23_spill] sm:$0xff] }
 0x10e   :  { %v1888_v1 = vpop.eup %1887 }
 0x10f   :  { %v2565_v56 = vmul.f32 %v1888_v1, %v433_v12  ;;  %v3568_v12 = vld [vmem:[#allocation13_spill] sm:$0xff]  ;;  %v3569_v1 = vld [vmem:[#allocation24_spill] sm:$0xff] }
 0x111   :  { %3554 = vst [vmem:[#allocation28_spill] sm:$0xff] %v2565_v56  ;;  %504 = vmatmul.mubr.f32.vlgmr.msra.gmra.mxu0 %v2565_v56  ;;  %575 = vmatmul.mubr.f32.vlgmr.msra.gmra.mxu1 %v2565_v56  ;;  %v3570_v56 = vld [vmem:[#allocation15_spill] sm:$0xff] }
 0x112   :  { %622 = vmatpush1.msra.mxu0 %v2077_v4  ;;  %693 = vmatpush1.msra.mxu1 %v2157_v21 }
 0x113   :  { %623 = vmatprep.subr.mxu0 %v3555_v19  ;;  %694 = vmatprep.subr.mxu1 %v2169_v23 }
 0x114   :  { %624 = vmatpush1.msra.mxu0 %v2094_v8  ;;  %695 = vmatpush1.msra.mxu1 %v2181_v25 }
 0x115   :  { %625 = vmatprep.subr.mxu0 %v2106_v11  ;;  %696 = vmatprep.subr.mxu1 %v2193_v27 }
 0x116   :  { %626 = vmatpush1.msra.mxu0 %v2115_v13  ;;  %697 = vmatpush1.msra.mxu1 %v2205_v29 }
 0x117   :  { %627 = vmatprep.subr.mxu0 %v2124_v15  ;;  %698 = vmatprep.subr.mxu1 %v2217_v31 }
 0x118   :  { %628 = vmatpush1.msra.mxu0 %v2133_v17  ;;  %699 = vmatpush1.msra.mxu1 %v2229_v33 }
 0x119   :  { %629 = vmatprep.subr.mxu0 %v2139_v18  ;;  %700 = vmatprep.subr.mxu1 %v2241_v35 }
 0x11a   :  { %630 = vmatpush1.msra.mxu0 %v2150_v20  ;;  %701 = vmatpush1.msra.mxu1 %v2253_v37 }
 0x11b   :  { %631 = vmatprep.subr.mxu0 %v2162_v22  ;;  %702 = vmatprep.subr.mxu1 %v2265_v39 }
 0x11c   :  { %632 = vmatpush1.msra.mxu0 %v2174_v24  ;;  %703 = vmatpush1.msra.mxu1 %v2277_v41 }
 0x11d   :  { %633 = vmatprep.subr.mxu0 %v2186_v26  ;;  %704 = vmatprep.subr.mxu1 %v2289_v43 }
 0x11e   :  { %634 = vmatpush1.msra.mxu0 %v2198_v28  ;;  %705 = vmatpush1.msra.mxu1 %v2301_v45 }
 0x11f   :  { %635 = vmatprep.subr.mxu0 %v2210_v30  ;;  %706 = vmatprep.subr.mxu1 %v2313_v47 }
 0x120   :  { %636 = vmatpush1.msra.mxu0 %v2222_v32  ;;  %707 = vmatpush1.msra.mxu1 %v2325_v49 }
 0x121   :  { %637 = vmatprep.subr.mxu0 %v2234_v34  ;;  %708 = vmatprep.subr.mxu1 %v2337_v51 }
 0x122   :  { %638 = vmatpush1.msra.mxu0 %v2246_v36  ;;  %709 = vmatpush1.msra.mxu1 %v2349_v53 }
 0x123   :  { %639 = vmatprep.subr.mxu0 %v2258_v38  ;;  %710 = vmatprep.subr.mxu1 %v2361_v55 }
 0x124   :  { %640 = vmatpush1.msra.mxu0 %v2270_v40  ;;  %711 = vmatpush1.msra.mxu1 %v2373_v57 }
 0x125   :  { %641 = vmatprep.subr.mxu0 %v2282_v42  ;;  %712 = vmatprep.subr.mxu1 %v2385_v59 }
 0x126   :  { %642 = vmatpush1.msra.mxu0 %v2294_v44  ;;  %713 = vmatpush1.msra.mxu1 %v2397_v61 }
 0x127   :  { %643 = vmatprep.subr.mxu0 %v2306_v46  ;;  %714 = vmatprep.subr.mxu1 %v2409_v63 }
 0x128   :  { %644 = vmatpush1.msra.mxu0 %v3556_v16  ;;  %715 = vmatpush1.msra.mxu1 %v3557_v3 }
 0x129   :  { %645 = vmatprep.subr.mxu0 %v3558_v14  ;;  %716 = vmatprep.subr.mxu1 %v3559_v62 }
 0x12a   :  { %646 = vmatpush1.msra.mxu0 %v3560_v7  ;;  %717 = vmatpush1.msra.mxu1 %v3561_v52  ;;  %v3571_v7 = vld [vmem:[#allocation25_spill] sm:$0xff] }
 0x12b   :  { %647 = vmatprep.subr.mxu0 %v3562_v2  ;;  %718 = vmatprep.subr.mxu1 %v3563_v5  ;;  %v3572_v52 = vld [vmem:[#allocation17_spill] sm:$0xff]  ;;  %v3573_v2 = vmov 0.0   ;;  %v3574_v5 = vld [vmem:[#allocation26_spill] sm:$0xff] }
 0x12c   :  { %648 = vmatpush1.msra.mxu0 %v3564_v0  ;;  %719 = vmatpush1.msra.mxu1 %v3565_v50  ;;  %v3575_v50 = vld [vmem:[#allocation3_spill] sm:$0xff] }
 0x12d   :  { %649 = vmatprep.subr.mxu0 %v3566_v60  ;;  %720 = vmatprep.subr.mxu1 %v3567_v10  ;;  %v3576_v60 = vld [vmem:[#allocation5_spill] sm:$0xff] }
 0x12e   :  { %650 = vmatpush1.msra.mxu0 %v3568_v12  ;;  %721 = vmatpush1.msra.mxu1 %v3569_v1 }
 0x12f   :  { %651 = vmatprep.subr.mxu0 %v3570_v56  ;;  %722 = vmatprep.subr.mxu1 %v3571_v7 }
 0x130   :  { %652 = vmatpush1.msra.mxu0 %v3572_v52  ;;  %685 = vmatprep.mubr.f32.mxu0 %v3573_v2 }
 0x131   :  { %723 = vmatpush1.msra.mxu1 %v3574_v5  ;;  %756 = vmatprep.mubr.f32.mxu1 %v3573_v2 }
 0x132   :  { %803 = vmatprep.subr.mxu0 %v3575_v50  ;;  %874 = vmatprep.subr.mxu1 %v3576_v60 }
 0x1d1   :  { %v505_v10 = vpop.f32.mrf.mxu0  ;;  %v576_v0 = vpop.f32.mrf.mxu1 }
 0x1d2   :  { %v585_v12 = vrot.slane %v505_v10, 7  ;;  %v587_v14 = vrot.slane %v576_v0, 7 }
 0x1d3   :  { %v507_v1 = vpop.f32.mrf.mxu0  ;;  %v578_v5 = vpop.f32.mrf.mxu1 }
 0x1d4   :  { %v593_v56 = vadd.f32 %v585_v12, %v2550_v9  ;;  %v586_v62 = vrot.slane %v507_v1, 7  ;;  %v595_v2 = vadd.f32 %v587_v14, %v2556_v6  ;;  %v588_v50 = vrot.slane %v578_v5, 7 }
 0x1d6   :  { %v597_v7 = vmul.f32 0.5, %v593_v56  ;;  %v594_v52 = vadd.f32 %v586_v62, %v2552_v54  ;;  %v596_v60 = vadd.f32 %v588_v50, %v2559_v48  ;;  %v611_v62 = vrot.slane %v2562_v58, 7  ;;  %v3578_v58 = vld [vmem:[#allocation16_spill] sm:$0xff] }
 0x1d8   :  { %1889 = vtanh.f32 %v597_v7  ;;  %v601_v3 = vmul.f32 0.5, %v594_v52  ;;  %v606_v10 = vmul.f32 0.5, %v596_v60  ;;  %v3580_v60 = vld [vmem:[#allocation18_spill] sm:$0xff] }
 0x1da   :  { %1891 = vtanh.f32 %v601_v3 }
 0x1db   :  { %1893 = vtanh.f32 %v595_v2 }
 0x1dc   :  { %1895 = vtanh.f32 %v606_v10  ;;  %v3581_v10 = vld [vmem:[#allocation8_spill] sm:$0xff] }
 0x1e5   :  { %v1890_v16 = vpop.eup %1889 }
 0x1e6   :  { %v599_v63 = vadd.f32 1.0, %v1890_v16  ;;  %v3579_v16 = vld [vmem:[#allocation7_spill] sm:$0xff] }
 0x1e7   :  { %v1892_v46 = vpop.eup %1891 }
 0x1e8   :  { %v600_v12 = vmul.f32 0.5, %v599_v63  ;;  %v603_v1 = vadd.f32 1.0, %v1892_v46  ;;  %v1894_v7 = vpop.eup %1893  ;;  %v3577_v46 = vld [vmem:[#allocation6_spill] sm:$0xff] }
 0x1e9   :  { %v1896_v3 = vpop.eup %1895 }
 0x1ea   :  { %v604_v56 = vmul.f32 0.5, %v603_v1  ;;  %v614_v0 = vmul.f32 %v1894_v7, %v600_v12  ;;  %v608_v14 = vadd.f32 1.0, %v1896_v3  ;;  %v3582_v12 = vld [vmem:[#allocation19_spill] sm:$0xff]  ;;  %v3583_v1 = vld [vmem:[#allocation9_spill] sm:$0xff]  ;;  %v3589_v3 = vld [vmem:[#allocation12_spill] sm:$0xff] }
 0x1eb   :  { %v3586_v7 = vld [vmem:[#allocation21_spill] sm:$0xff] }
 0x1ec   :  { %v613_v52 = vmul.f32 %v611_v62, %v604_v56  ;;  %v609_v2 = vmul.f32 0.5, %v608_v14  ;;  %v3584_v56 = vld [vmem:[#allocation20_spill] sm:$0xff]  ;;  %v3585_v62 = vld [vmem:[#allocation10_spill] sm:$0xff]  ;;  %v3590_v14 = vld [vmem:[#allocation23_spill] sm:$0xff] }
 0x1ee   :  { %v2640_v54 = vadd.f32 %v614_v0, %v613_v52  ;;  %v3587_v52 = vld [vmem:[#allocation11_spill] sm:$0xff]  ;;  %v3588_v0 = vld [vmem:[#allocation22_spill] sm:$0xff] }
 0x1f0   :  { %1897 = vtanh.f32 %v2640_v54 }
 0x1fd   :  { %v1898_v5 = vpop.eup %1897 }
 0x1fe   :  { %v2643_v50 = vmul.f32 %v1898_v5, %v609_v2  ;;  %v3591_v2 = vld [vmem:[#allocation13_spill] sm:$0xff]  ;;  %v3592_v5 = vld [vmem:[#allocation24_spill] sm:$0xff] }
 0x200   :  { %v619_v63 = vrot.slane %v2643_v50, 1 }
 0x202   :  { %686 = vmatmul.mubr.f32.vlgmr.msra.gmra.mxu0 %v619_v63  ;;  %757 = vmatmul.mubr.f32.vlgmr.msra.gmra.mxu1 %v619_v63  ;;  %v3593_v63 = vld [vmem:[#allocation15_spill] sm:$0xff] }
 0x203   :  { %804 = vmatpush1.msra.mxu0 %v2077_v4  ;;  %875 = vmatpush1.msra.mxu1 %v2157_v21 }
 0x204   :  { %805 = vmatprep.subr.mxu0 %v3555_v19  ;;  %876 = vmatprep.subr.mxu1 %v2169_v23 }
 0x205   :  { %806 = vmatpush1.msra.mxu0 %v2094_v8  ;;  %877 = vmatpush1.msra.mxu1 %v2181_v25 }
 0x206   :  { %807 = vmatprep.subr.mxu0 %v2106_v11  ;;  %878 = vmatprep.subr.mxu1 %v2193_v27 }
 0x207   :  { %808 = vmatpush1.msra.mxu0 %v2115_v13  ;;  %879 = vmatpush1.msra.mxu1 %v2205_v29 }
 0x208   :  { %809 = vmatprep.subr.mxu0 %v2124_v15  ;;  %880 = vmatprep.subr.mxu1 %v2217_v31 }
 0x209   :  { %810 = vmatpush1.msra.mxu0 %v2133_v17  ;;  %881 = vmatpush1.msra.mxu1 %v2229_v33 }
 0x20a   :  { %811 = vmatprep.subr.mxu0 %v2139_v18  ;;  %882 = vmatprep.subr.mxu1 %v2241_v35 }
 0x20b   :  { %812 = vmatpush1.msra.mxu0 %v2150_v20  ;;  %883 = vmatpush1.msra.mxu1 %v2253_v37 }
 0x20c   :  { %813 = vmatprep.subr.mxu0 %v2162_v22  ;;  %884 = vmatprep.subr.mxu1 %v2265_v39 }
 0x20d   :  { %814 = vmatpush1.msra.mxu0 %v2174_v24  ;;  %885 = vmatpush1.msra.mxu1 %v2277_v41 }
 0x20e   :  { %815 = vmatprep.subr.mxu0 %v2186_v26  ;;  %886 = vmatprep.subr.mxu1 %v2289_v43 }
 0x20f   :  { %816 = vmatpush1.msra.mxu0 %v2198_v28  ;;  %887 = vmatpush1.msra.mxu1 %v2301_v45 }
 0x210   :  { %817 = vmatprep.subr.mxu0 %v2210_v30  ;;  %888 = vmatprep.subr.mxu1 %v2313_v47 }
 0x211   :  { %818 = vmatpush1.msra.mxu0 %v2222_v32  ;;  %889 = vmatpush1.msra.mxu1 %v2325_v49 }
 0x212   :  { %819 = vmatprep.subr.mxu0 %v2234_v34  ;;  %890 = vmatprep.subr.mxu1 %v2337_v51 }
 0x213   :  { %820 = vmatpush1.msra.mxu0 %v2246_v36  ;;  %891 = vmatpush1.msra.mxu1 %v2349_v53 }
 0x214   :  { %821 = vmatprep.subr.mxu0 %v2258_v38  ;;  %892 = vmatprep.subr.mxu1 %v2361_v55 }
 0x215   :  { %822 = vmatpush1.msra.mxu0 %v2270_v40  ;;  %893 = vmatpush1.msra.mxu1 %v2373_v57 }
 0x216   :  { %823 = vmatprep.subr.mxu0 %v2282_v42  ;;  %894 = vmatprep.subr.mxu1 %v2385_v59 }
 0x217   :  { %824 = vmatpush1.msra.mxu0 %v2294_v44  ;;  %895 = vmatpush1.msra.mxu1 %v2397_v61 }
 0x218   :  { %825 = vmatprep.subr.mxu0 %v3577_v46  ;;  %896 = vmatprep.subr.mxu1 %v3578_v58 }
 0x219   :  { %826 = vmatpush1.msra.mxu0 %v3579_v16  ;;  %897 = vmatpush1.msra.mxu1 %v3580_v60 }
 0x21a   :  { %827 = vmatprep.subr.mxu0 %v3581_v10  ;;  %898 = vmatprep.subr.mxu1 %v3582_v12 }
 0x21b   :  { %828 = vmatpush1.msra.mxu0 %v3583_v1  ;;  %899 = vmatpush1.msra.mxu1 %v3584_v56  ;;  %v3594_v1 = vld [vmem:[#allocation25_spill] sm:$0xff] }
 0x21c   :  { %829 = vmatprep.subr.mxu0 %v3585_v62  ;;  %900 = vmatprep.subr.mxu1 %v3586_v7  ;;  %v3595_v56 = vld [vmem:[#allocation17_spill] sm:$0xff]  ;;  %v3596_v62 = vmov 0.0   ;;  %v3597_v7 = vld [vmem:[#allocation26_spill] sm:$0xff] }
 0x21d   :  { %830 = vmatpush1.msra.mxu0 %v3587_v52  ;;  %901 = vmatpush1.msra.mxu1 %v3588_v0  ;;  %v3598_v0 = vld [vmem:[#allocation3_spill] sm:$0xff] }
 0x21e   :  { %831 = vmatprep.subr.mxu0 %v3589_v3  ;;  %902 = vmatprep.subr.mxu1 %v3590_v14  ;;  %v3599_v3 = vld [vmem:[#allocation5_spill] sm:$0xff] }
 0x21f   :  { %832 = vmatpush1.msra.mxu0 %v3591_v2  ;;  %903 = vmatpush1.msra.mxu1 %v3592_v5 }
 0x220   :  { %833 = vmatprep.subr.mxu0 %v3593_v63  ;;  %904 = vmatprep.subr.mxu1 %v3594_v1 }
 0x221   :  { %834 = vmatpush1.msra.mxu0 %v3595_v56  ;;  %867 = vmatprep.mubr.f32.mxu0 %v3596_v62  ;;  %v3600_v56 = vld [vmem:[#allocation27_spill] sm:$0xff] }
 0x222   :  { %905 = vmatpush1.msra.mxu1 %v3597_v7  ;;  %938 = vmatprep.mubr.f32.mxu1 %v3596_v62 }
 0x223   :  { %985 = vmatprep.subr.mxu0 %v3598_v0  ;;  %1056 = vmatprep.subr.mxu1 %v3599_v3 }
 0x2c2   :  { %v687_v14 = vpop.f32.mrf.mxu0  ;;  %v758_v52 = vpop.f32.mrf.mxu1 }
 0x2c3   :  { %v767_v2 = vrot.slane %v687_v14, 6  ;;  %v769_v10 = vrot.slane %v758_v52, 6 }
 0x2c4   :  { %v689_v5 = vpop.f32.mrf.mxu0  ;;  %v760_v7 = vpop.f32.mrf.mxu1 }
 0x2c5   :  { %v775_v63 = vadd.f32 %v767_v2, %v2550_v9  ;;  %v768_v12 = vrot.slane %v689_v5, 6  ;;  %v777_v62 = vadd.f32 %v769_v10, %v2556_v6  ;;  %v770_v0 = vrot.slane %v760_v7, 6 }
 0x2c7   :  { %v779_v1 = vmul.f32 0.5, %v775_v63  ;;  %v776_v60 = vadd.f32 %v768_v12, %v3600_v56  ;;  %v778_v3 = vadd.f32 %v770_v0, %v2559_v48  ;;  %v793_v12 = vrot.slane %v2640_v54, 7 }
 0x2c9   :  { %1899 = vtanh.f32 %v779_v1  ;;  %v783_v16 = vmul.f32 0.5, %v776_v60  ;;  %v788_v14 = vmul.f32 0.5, %v778_v3 }
 0x2cb   :  { %1901 = vtanh.f32 %v783_v16 }
 0x2cc   :  { %1903 = vtanh.f32 %v777_v62 }
 0x2cd   :  { %1905 = vtanh.f32 %v788_v14 }
 0x2d6   :  { %v1900_v58 = vpop.eup %1899 }
 0x2d7   :  { %v781_v46 = vadd.f32 1.0, %v1900_v58 }
 0x2d8   :  { %v1902_v61 = vpop.eup %1901 }
 0x2d9   :  { %v782_v2 = vmul.f32 0.5, %v781_v46  ;;  %v785_v5 = vadd.f32 1.0, %v1902_v61  ;;  %v1904_v1 = vpop.eup %1903  ;;  %v3601_v61 = vld [vmem:[#allocation28_spill] sm:$0xff] }
 0x2da   :  { %v1906_v16 = vpop.eup %1905  ;;  %v1711_v46 = vsel %vm1710_vm1, %v3601_v61, %v2643_v50 }
 0x2db   :  { %v786_v52 = vmul.f32 0.5, %v785_v5  ;;  %v796_v63 = vmul.f32 %v1904_v1, %v782_v2  ;;  %v790_v10 = vadd.f32 1.0, %v1906_v16 }
 0x2dd   :  { %v795_v60 = vmul.f32 %v793_v12, %v786_v52  ;;  %v791_v62 = vmul.f32 0.5, %v790_v10 }
 0x2df   :  { %v2717_v56 = vadd.f32 %v796_v63, %v795_v60 }
 0x2e1   :  { %1907 = vtanh.f32 %v2717_v56  ;;  %v975_v52 = vrot.slane %v2717_v56, 7  ;;  %v2814_v56 = vld [vmem:[%s3428_s2 + $0x1e0] sm:$0xff] }
 0x2ee   :  { %v1908_v7 = vpop.eup %1907 }
 0x2ef   :  { %v799_v58 = vmul.f32 %v1908_v7, %v791_v62 }
 0x2f1   :  { %v801_v0 = vrot.slane %v799_v58, 2  ;;  %v2722_v3 = vsel %vm1712_vm2, %v1711_v46, %v799_v58 }
 0x2f3   :  { %868 = vmatmul.mubr.f32.vlgmr.msra.gmra.mxu0 %v801_v0  ;;  %939 = vmatmul.mubr.f32.vlgmr.msra.gmra.mxu1 %v801_v0  ;;  %v2820_v0 = vld [vmem:[%s3428_s2 + $0x1f0] sm:$0xff] }
 0x2f4   :  { %986 = vmatpush1.msra.mxu0 %v2077_v4  ;;  %1057 = vmatpush1.msra.mxu1 %v2157_v21  ;;  %v3602_v4 = vld [vmem:[#allocation14_spill] sm:$0xff]  ;;  %v3610_v21 = vld [vmem:[#allocation20_spill] sm:$0xff] }
 0x2f5   :  { %987 = vmatprep.subr.mxu0 %v3555_v19  ;;  %1058 = vmatprep.subr.mxu1 %v2169_v23  ;;  %v3612_v23 = vld [vmem:[#allocation21_spill] sm:$0xff] }
 0x2f6   :  { %988 = vmatpush1.msra.mxu0 %v2094_v8  ;;  %1059 = vmatpush1.msra.mxu1 %v2181_v25  ;;  %v3603_v8 = vld [vmem:[#allocation6_spill] sm:$0xff] }
 0x2f7   :  { %989 = vmatprep.subr.mxu0 %v2106_v11  ;;  %1060 = vmatprep.subr.mxu1 %v2193_v27  ;;  %v3604_v11 = vld [vmem:[#allocation16_spill] sm:$0xff]  ;;  %v3614_v25 = vld [vmem:[#allocation22_spill] sm:$0xff]  ;;  %v3616_v27 = vld [vmem:[#allocation23_spill] sm:$0xff] }
 0x2f8   :  { %990 = vmatpush1.msra.mxu0 %v2115_v13  ;;  %1061 = vmatpush1.msra.mxu1 %v2205_v29  ;;  %v3605_v13 = vld [vmem:[#allocation7_spill] sm:$0xff]  ;;  %v3618_v29 = vld [vmem:[#allocation24_spill] sm:$0xff] }
 0x2f9   :  { %991 = vmatprep.subr.mxu0 %v2124_v15  ;;  %1062 = vmatprep.subr.mxu1 %v2217_v31  ;;  %v3606_v15 = vld [vmem:[#allocation18_spill] sm:$0xff]  ;;  %v3620_v31 = vld [vmem:[#allocation25_spill] sm:$0xff] }
 0x2fa   :  { %992 = vmatpush1.msra.mxu0 %v2133_v17  ;;  %1063 = vmatpush1.msra.mxu1 %v2229_v33  ;;  %v3607_v17 = vld [vmem:[#allocation8_spill] sm:$0xff]  ;;  %v3622_v33 = vmov 0.0  }
 0x2fb   :  { %993 = vmatprep.subr.mxu0 %v2139_v18  ;;  %1064 = vmatprep.subr.mxu1 %v2241_v35  ;;  %v3608_v18 = vld [vmem:[#allocation19_spill] sm:$0xff]  ;;  %v2791_v35 = vld [vmem:[%s3428_s2 + $0x1e8] sm:$0xff] }
 0x2fc   :  { %994 = vmatpush1.msra.mxu0 %v2150_v20  ;;  %1065 = vmatpush1.msra.mxu1 %v2253_v37  ;;  %v3609_v20 = vld [vmem:[#allocation9_spill] sm:$0xff]  ;;  %3624 = vst [vmem:[#allocation4_spill] sm:$0xff] %v2791_v35 }
 0x2fd   :  { %995 = vmatprep.subr.mxu0 %v2162_v22  ;;  %1066 = vmatprep.subr.mxu1 %v2265_v39  ;;  %v3611_v22 = vld [vmem:[#allocation10_spill] sm:$0xff] }
 0x2fe   :  { %996 = vmatpush1.msra.mxu0 %v2174_v24  ;;  %1067 = vmatpush1.msra.mxu1 %v2277_v41  ;;  %v3613_v24 = vld [vmem:[#allocation11_spill] sm:$0xff] }
 0x2ff   :  { %997 = vmatprep.subr.mxu0 %v2186_v26  ;;  %1068 = vmatprep.subr.mxu1 %v2289_v43  ;;  %v3615_v26 = vld [vmem:[#allocation12_spill] sm:$0xff] }
 0x300   :  { %998 = vmatpush1.msra.mxu0 %v2198_v28  ;;  %1069 = vmatpush1.msra.mxu1 %v2301_v45  ;;  %v3617_v28 = vld [vmem:[#allocation13_spill] sm:$0xff]  ;;  %v3626_v45 = vld [vmem:[#allocation27_spill] sm:$0xff] }
 0x301   :  { %999 = vmatprep.subr.mxu0 %v2210_v30  ;;  %1070 = vmatprep.subr.mxu1 %v2313_v47  ;;  %v3619_v30 = vld [vmem:[#allocation15_spill] sm:$0xff] }
 0x302   :  { %1000 = vmatpush1.msra.mxu0 %v2222_v32  ;;  %1071 = vmatpush1.msra.mxu1 %v2325_v49  ;;  %v3621_v32 = vld [vmem:[#allocation17_spill] sm:$0xff] }
 0x303   :  { %1001 = vmatprep.subr.mxu0 %v2234_v34  ;;  %1072 = vmatprep.subr.mxu1 %v2337_v51  ;;  %v3623_v34 = vld [vmem:[#allocation26_spill] sm:$0xff] }
 0x304   :  { %1002 = vmatpush1.msra.mxu0 %v2246_v36  ;;  %1073 = vmatpush1.msra.mxu1 %v2349_v53  ;;  %v2797_v36 = vld [vmem:[%s3428_s2 + $0x1f8] sm:$0xff] }
 0x305   :  { %1003 = vmatprep.subr.mxu0 %v2258_v38  ;;  %1074 = vmatprep.subr.mxu1 %v2361_v55  ;;  %3625 = vst [vmem:[#allocation3_spill] sm:$0xff] %v2797_v36 }
 0x306   :  { %1004 = vmatpush1.msra.mxu0 %v2270_v40  ;;  %1075 = vmatpush1.msra.mxu1 %v2373_v57 }
 0x307   :  { %1005 = vmatprep.subr.mxu0 %v2282_v42  ;;  %1076 = vmatprep.subr.mxu1 %v2385_v59 }
 0x308   :  { %1006 = vmatpush1.msra.mxu0 %v2294_v44  ;;  %1077 = vmatpush1.msra.mxu1 %v3602_v4  ;;  %v2832_v4 = vld [vmem:[%s3428_s2 + $0x1d8] sm:$0xff] }
 0x309   :  { %1007 = vmatprep.subr.mxu0 %v3603_v8  ;;  %1078 = vmatprep.subr.mxu1 %v3604_v11  ;;  %v2838_v8 = vld [vmem:[%s3428_s2 + $0x1c0] sm:$0xff]  ;;  %v2844_v11 = vld [vmem:[%s3428_s2 + $0x1d0] sm:$0xff] }
 0x30a   :  { %1008 = vmatpush1.msra.mxu0 %v3605_v13  ;;  %1079 = vmatpush1.msra.mxu1 %v3606_v15  ;;  %v2850_v13 = vld [vmem:[%s3428_s2 + $0x1a8] sm:$0xff]  ;;  %v2856_v15 = vld [vmem:[%s3428_s2 + $0x1b8] sm:$0xff] }
 0x30b   :  { %1009 = vmatprep.subr.mxu0 %v3607_v17  ;;  %1080 = vmatprep.subr.mxu1 %v3608_v18  ;;  %v2862_v17 = vld [vmem:[%s3428_s2 + $0x1a0] sm:$0xff] }
 0x30c   :  { %1010 = vmatpush1.msra.mxu0 %v3609_v20  ;;  %1081 = vmatpush1.msra.mxu1 %v3610_v21  ;;  %v2868_v20 = vld [vmem:[%s3428_s2 + $0x1b0] sm:$0xff] }
 0x30d   :  { %1011 = vmatprep.subr.mxu0 %v3611_v22  ;;  %1082 = vmatprep.subr.mxu1 %v3612_v23  ;;  %v2874_v22 = vld [vmem:[%s3428_s2 + $0x188] sm:$0xff] }
 0x30e   :  { %1012 = vmatpush1.msra.mxu0 %v3613_v24  ;;  %1083 = vmatpush1.msra.mxu1 %v3614_v25  ;;  %v2880_v24 = vld [vmem:[%s3428_s2 + $0x198] sm:$0xff] }
 0x30f   :  { %1013 = vmatprep.subr.mxu0 %v3615_v26  ;;  %1084 = vmatprep.subr.mxu1 %v3616_v27  ;;  %v2886_v26 = vld [vmem:[%s3428_s2 + $0x180] sm:$0xff] }
 0x310   :  { %1014 = vmatpush1.msra.mxu0 %v3617_v28  ;;  %1085 = vmatpush1.msra.mxu1 %v3618_v29  ;;  %v2892_v28 = vld [vmem:[%s3428_s2 + $0x190] sm:$0xff] }
 0x311   :  { %1015 = vmatprep.subr.mxu0 %v3619_v30  ;;  %1086 = vmatprep.subr.mxu1 %v3620_v31  ;;  %v2898_v30 = vld [vmem:[%s3428_s2 + $0x168] sm:$0xff] }
 0x312   :  { %1016 = vmatpush1.msra.mxu0 %v3621_v32  ;;  %1049 = vmatprep.mubr.f32.mxu0 %v3622_v33  ;;  %v2904_v32 = vld [vmem:[%s3428_s2 + $0x178] sm:$0xff] }
 0x313   :  { %1087 = vmatpush1.msra.mxu1 %v3623_v34  ;;  %1120 = vmatprep.mubr.f32.mxu1 %v3622_v33 }
 0x314   :  { %1167 = vmatprep.subr.mxu0 %v2791_v35  ;;  %1238 = vmatprep.subr.mxu1 %v2797_v36 }
 0x3b3   :  { %v869_v37 = vpop.f32.mrf.mxu0  ;;  %v940_v39 = vpop.f32.mrf.mxu1 }
 0x3b4   :  { %v949_v38 = vrot.slane %v869_v37, 5  ;;  %v951_v44 = vrot.slane %v940_v39, 5  ;;  %v2910_v37 = vld [vmem:[%s3428_s2 + $0x160] sm:$0xff]  ;;  %v2922_v39 = vld [vmem:[%s3428_s2 + $0x148] sm:$0xff] }
 0x3b5   :  { %v871_v40 = vpop.f32.mrf.mxu0  ;;  %v942_v51 = vpop.f32.mrf.mxu1 }
 0x3b6   :  { %v957_v41 = vadd.f32 %v949_v38, %v2550_v9  ;;  %v950_v42 = vrot.slane %v871_v40, 5  ;;  %v959_v53 = vadd.f32 %v951_v44, %v2556_v6  ;;  %v952_v54 = vrot.slane %v942_v51, 5  ;;  %v2916_v38 = vld [vmem:[%s3428_s2 + $0x170] sm:$0xff]  ;;  %v2928_v40 = vld [vmem:[%s3428_s2 + $0x158] sm:$0xff]  ;;  %v2970_v51 = vld [vmem:[%s3428_s2 + $0x108] sm:$0xff] }
 0x3b7   :  { %v2952_v44 = vld [vmem:[%s3428_s2 + $0x138] sm:$0xff] }
 0x3b8   :  { %v961_v43 = vmul.f32 0.5, %v957_v41  ;;  %v958_v47 = vadd.f32 %v950_v42, %v3626_v45  ;;  %v960_v55 = vadd.f32 %v952_v54, %v2559_v48  ;;  %v2934_v41 = vld [vmem:[%s3428_s2 + $0x140] sm:$0xff]  ;;  %v2940_v42 = vld [vmem:[%s3428_s2 + $0x150] sm:$0xff] }
 0x3b9   :  { %v2982_v54 = vld [vmem:[%s3428_s2 + $0x100] sm:$0xff] }
 0x3ba   :  { %1909 = vtanh.f32 %v961_v43  ;;  %v965_v49 = vmul.f32 0.5, %v958_v47  ;;  %v970_v57 = vmul.f32 0.5, %v960_v55  ;;  %v2946_v43 = vld [vmem:[%s3428_s2 + $0x128] sm:$0xff]  ;;  %v2958_v47 = vld [vmem:[%s3428_s2 + $0x120] sm:$0xff]  ;;  %v2988_v55 = vld [vmem:[%s3428_s2 + $0x110] sm:$0xff] }
 0x3bc   :  { %1911 = vtanh.f32 %v965_v49  ;;  %v2964_v49 = vld [vmem:[%s3428_s2 + $0x130] sm:$0xff] }
 0x3bd   :  { %1913 = vtanh.f32 %v959_v53  ;;  %v2976_v53 = vld [vmem:[%s3428_s2 + $0x118] sm:$0xff] }
 0x3be   :  { %1915 = vtanh.f32 %v970_v57  ;;  %v2994_v57 = vld [vmem:[%s3428_s2 + $0xe8] sm:$0xff] }
 0x3c7   :  { %v1910_v59 = vpop.eup %1909 }
 0x3c8   :  { %v963_v19 = vadd.f32 1.0, %v1910_v59  ;;  %v3000_v59 = vld [vmem:[%s3428_s2 + $0xf8] sm:$0xff] }
 0x3c9   :  { %v1912_v50 = vpop.eup %1911 }
 0x3ca   :  { %v964_v14 = vmul.f32 0.5, %v963_v19  ;;  %v967_v2 = vadd.f32 1.0, %v1912_v50  ;;  %v1914_v12 = vpop.eup %1913  ;;  %v3006_v19 = vld [vmem:[%s3428_s2 + $0xe0] sm:$0xff]  ;;  %v3012_v50 = vld [vmem:[%s3428_s2 + $0xf0] sm:$0xff] }
 0x3cb   :  { %v1916_v16 = vpop.eup %1915 }
 0x3cc   :  { %v968_v5 = vmul.f32 0.5, %v967_v2  ;;  %v978_v60 = vmul.f32 %v1914_v12, %v964_v14  ;;  %v972_v10 = vadd.f32 1.0, %v1916_v16  ;;  %v3018_v14 = vld [vmem:[%s3428_s2 + $0xc8] sm:$0xff]  ;;  %v3024_v2 = vld [vmem:[%s3428_s2 + $0xd8] sm:$0xff]  ;;  %v3060_v16 = vld [vmem:[%s3428_s2 + $0xb0] sm:$0xff] }
 0x3cd   :  { %v3042_v12 = vld [vmem:[%s3428_s2 + $0xa8] sm:$0xff]  ;;  %3627 = vst [vmem:[#allocation5_spill] sm:$0xff] %v3060_v16 }
 0x3ce   :  { %v977_v1 = vmul.f32 %v975_v52, %v968_v5  ;;  %v973_v62 = vmul.f32 0.5, %v972_v10  ;;  %v3030_v5 = vld [vmem:[%s3428_s2 + $0xc0] sm:$0xff]  ;;  %v3036_v52 = vld [vmem:[%s3428_s2 + $0xd0] sm:$0xff]  ;;  %v3066_v10 = vld [vmem:[%s3428_s2 + $0x88] sm:$0xff] }
 0x3cf   :  { %3628 = vst [vmem:[#allocation28_spill] sm:$0xff] %v3066_v10 }
 0x3d0   :  { %v2805_v63 = vadd.f32 %v978_v60, %v977_v1  ;;  %v3048_v1 = vld [vmem:[%s3428_s2 + $0xb8] sm:$0xff]  ;;  %v3054_v60 = vld [vmem:[%s3428_s2 + $0xa0] sm:$0xff] }
 0x3d2   :  { %1917 = vtanh.f32 %v2805_v63 }
 0x3df   :  { %v1918_v7 = vpop.eup %1917 }
 0x3e0   :  { %v981_v58 = vmul.f32 %v1918_v7, %v973_v62  ;;  %v3072_v62 = vld [vmem:[%s3428_s2 + $0x98] sm:$0xff]  ;;  %v3078_v7 = vld [vmem:[%s3428_s2 + $0x80] sm:$0xff] }
 0x3e1   :  { %3629 = vst [vmem:[#allocation14_spill] sm:$0xff] %v3072_v62  ;;  %3630 = vst [vmem:[#allocation6_spill] sm:$0xff] %v3078_v7 }
 0x3e2   :  { %v983_v61 = vrot.slane %v981_v58, 3  ;;  %v2809_v46 = vsel %vm1714_vm3, %v2722_v3, %v981_v58  ;;  %v2826_v3 = vld [vmem:[%s3428_s2 + $0x1c8] sm:$0xff]  ;;  %v3084_v58 = vld [vmem:[%s3428_s2 + $0x90] sm:$0xff] }
 0x3e3   :  { %3631 = vst [vmem:[#allocation16_spill] sm:$0xff] %v3084_v58 }
 0x3e4   :  { %1050 = vmatmul.mubr.f32.vlgmr.msra.gmra.mxu0 %v983_v61  ;;  %1121 = vmatmul.mubr.f32.vlgmr.msra.gmra.mxu1 %v983_v61  ;;  %v3090_v61 = vld [vmem:[%s3428_s2 + $0x68] sm:$0xff] }
 0x3e5   :  { %1168 = vmatpush1.msra.mxu0 %v2814_v56  ;;  %1239 = vmatpush1.msra.mxu1 %v2820_v0  ;;  %3632 = vst [vmem:[#allocation7_spill] sm:$0xff] %v3090_v61 }
 0x3e6   :  { %1169 = vmatprep.subr.mxu0 %v2826_v3  ;;  %1240 = vmatprep.subr.mxu1 %v2832_v4 }
 0x3e7   :  { %1170 = vmatpush1.msra.mxu0 %v2838_v8  ;;  %1241 = vmatpush1.msra.mxu1 %v2844_v11 }
 0x3e8   :  { %1171 = vmatprep.subr.mxu0 %v2850_v13  ;;  %1242 = vmatprep.subr.mxu1 %v2856_v15 }
 0x3e9   :  { %1172 = vmatpush1.msra.mxu0 %v2862_v17  ;;  %1243 = vmatpush1.msra.mxu1 %v2868_v20 }
 0x3ea   :  { %1173 = vmatprep.subr.mxu0 %v2874_v22  ;;  %1244 = vmatprep.subr.mxu1 %v2880_v24 }
 0x3eb   :  { %1174 = vmatpush1.msra.mxu0 %v2886_v26  ;;  %1245 = vmatpush1.msra.mxu1 %v2892_v28 }
 0x3ec   :  { %1175 = vmatprep.subr.mxu0 %v2898_v30  ;;  %1246 = vmatprep.subr.mxu1 %v2904_v32 }
 0x3ed   :  { %1176 = vmatpush1.msra.mxu0 %v2910_v37  ;;  %1247 = vmatpush1.msra.mxu1 %v2916_v38 }
 0x3ee   :  { %1177 = vmatprep.subr.mxu0 %v2922_v39  ;;  %1248 = vmatprep.subr.mxu1 %v2928_v40 }
 0x3ef   :  { %1178 = vmatpush1.msra.mxu0 %v2934_v41  ;;  %1249 = vmatpush1.msra.mxu1 %v2940_v42 }
 0x3f0   :  { %1179 = vmatprep.subr.mxu0 %v2946_v43  ;;  %1250 = vmatprep.subr.mxu1 %v2952_v44 }
 0x3f1   :  { %1180 = vmatpush1.msra.mxu0 %v2958_v47  ;;  %1251 = vmatpush1.msra.mxu1 %v2964_v49 }
 0x3f2   :  { %1181 = vmatprep.subr.mxu0 %v2970_v51  ;;  %1252 = vmatprep.subr.mxu1 %v2976_v53 }
 0x3f3   :  { %1182 = vmatpush1.msra.mxu0 %v2982_v54  ;;  %1253 = vmatpush1.msra.mxu1 %v2988_v55 }
 0x3f4   :  { %1183 = vmatprep.subr.mxu0 %v2994_v57  ;;  %1254 = vmatprep.subr.mxu1 %v3000_v59 }
 0x3f5   :  { %1184 = vmatpush1.msra.mxu0 %v3006_v19  ;;  %1255 = vmatpush1.msra.mxu1 %v3012_v50 }
 0x3f6   :  { %1185 = vmatprep.subr.mxu0 %v3018_v14  ;;  %1256 = vmatprep.subr.mxu1 %v3024_v2 }
 0x3f7   :  { %1186 = vmatpush1.msra.mxu0 %v3030_v5  ;;  %1257 = vmatpush1.msra.mxu1 %v3036_v52 }
 0x3f8   :  { %1187 = vmatprep.subr.mxu0 %v3042_v12  ;;  %1258 = vmatprep.subr.mxu1 %v3048_v1 }
 0x3f9   :  { %1188 = vmatpush1.msra.mxu0 %v3054_v60  ;;  %1259 = vmatpush1.msra.mxu1 %v3060_v16 }
 0x3fa   :  { %1189 = vmatprep.subr.mxu0 %v3066_v10  ;;  %1260 = vmatprep.subr.mxu1 %v3072_v62 }
 0x3fb   :  { %1190 = vmatpush1.msra.mxu0 %v3078_v7  ;;  %1261 = vmatpush1.msra.mxu1 %v3084_v58  ;;  %v3097_v7 = vld [vmem:[%s3428_s2 + $0x60] sm:$0xff]  ;;  %v3104_v58 = vld [vmem:[%s3428_s2 + $0x48] sm:$0xff] }
 0x3fc   :  { %1191 = vmatprep.subr.mxu0 %v3090_v61  ;;  %1262 = vmatprep.subr.mxu1 %v3608_v18  ;;  %3633 = vst [vmem:[#allocation18_spill] sm:$0xff] %v3097_v7  ;;  %3634 = vst [vmem:[#allocation8_spill] sm:$0xff] %v3104_v58  ;;  %v3111_v18 = vld [vmem:[%s3428_s2 + $0x40] sm:$0xff] }
 0x3fd   :  { %1192 = vmatpush1.msra.mxu0 %v3097_v7  ;;  %1263 = vmatpush1.msra.mxu1 %v3610_v21  ;;  %3635 = vst [vmem:[#allocation19_spill] sm:$0xff] %v3111_v18  ;;  %v3118_v21 = vld [vmem:[%s3428_s2 + $0x28] sm:$0xff] }
 0x3fe   :  { %1193 = vmatprep.subr.mxu0 %v3104_v58  ;;  %1264 = vmatprep.subr.mxu1 %v3612_v23  ;;  %3636 = vst [vmem:[#allocation9_spill] sm:$0xff] %v3118_v21  ;;  %v3125_v23 = vld [vmem:[%s3428_s2 + $0x20] sm:$0xff] }
 0x3ff   :  { %1194 = vmatpush1.msra.mxu0 %v3111_v18  ;;  %1265 = vmatpush1.msra.mxu1 %v3614_v25  ;;  %3637 = vst [vmem:[#allocation20_spill] sm:$0xff] %v3125_v23  ;;  %v3132_v25 = vld [vmem:[%s3428_s2 + $0x8] sm:$0xff] }
 0x400   :  { %1195 = vmatprep.subr.mxu0 %v3118_v21  ;;  %1266 = vmatprep.subr.mxu1 %v3616_v27  ;;  %3638 = vst [vmem:[#allocation10_spill] sm:$0xff] %v3132_v25  ;;  %v3139_v27 = vld [vmem:[%s3428_s2] sm:$0xff] }
 0x401   :  { %1196 = vmatpush1.msra.mxu0 %v3125_v23  ;;  %1267 = vmatpush1.msra.mxu1 %v3618_v29  ;;  %3639 = vst [vmem:[#allocation21_spill] sm:$0xff] %v3139_v27 }
 0x402   :  { %1197 = vmatprep.subr.mxu0 %v3132_v25  ;;  %1268 = vmatprep.subr.mxu1 %v3620_v31 }
 0x403   :  { %1198 = vmatpush1.msra.mxu0 %v3139_v27  ;;  %1231 = vmatprep.mubr.f32.mxu0 %v3622_v33 }
 0x404   :  { %1269 = vmatpush1.msra.mxu1 %v3623_v34  ;;  %1302 = vmatprep.mubr.f32.mxu1 %v3622_v33 }
 0x405   :  { %1349 = vmatprep.subr.mxu0 %v2791_v35  ;;  %1420 = vmatprep.subr.mxu1 %v2797_v36 }
 0x4a4   :  { %v1051_v29 = vpop.f32.mrf.mxu0  ;;  %v1122_v31 = vpop.f32.mrf.mxu1 }
 0x4a5   :  { %v1131_v25 = vrot.slane %v1051_v29, 4  ;;  %v1133_v7 = vrot.slane %v1122_v31, 4 }
 0x4a6   :  { %v1053_v23 = vpop.f32.mrf.mxu0  ;;  %v1124_v34 = vpop.f32.mrf.mxu1 }
 0x4a7   :  { %v1139_v21 = vadd.f32 %v1131_v25, %v2550_v9  ;;  %v1132_v18 = vrot.slane %v1053_v23, 4  ;;  %v1141_v33 = vadd.f32 %v1133_v7, %v2556_v6  ;;  %v1134_v35 = vrot.slane %v1124_v34, 4  ;;  %v3643_v34 = vld [vmem:[#allocation6_spill] sm:$0xff] }
 0x4a9   :  { %v1143_v58 = vmul.f32 0.5, %v1139_v21  ;;  %v1140_v27 = vadd.f32 %v1132_v18, %v3626_v45  ;;  %v1142_v36 = vadd.f32 %v1134_v35, %v2559_v48  ;;  %v1157_v18 = vrot.slane %v2805_v63, 7  ;;  %v3640_v63 = vld [vmem:[#allocation5_spill] sm:$0xff] }
 0x4ab   :  { %1919 = vtanh.f32 %v1143_v58  ;;  %v1147_v61 = vmul.f32 0.5, %v1140_v27  ;;  %v1152_v29 = vmul.f32 0.5, %v1142_v36 }
 0x4ad   :  { %1921 = vtanh.f32 %v1147_v61 }
 0x4ae   :  { %1923 = vtanh.f32 %v1141_v33 }
 0x4af   :  { %1925 = vtanh.f32 %v1152_v29  ;;  %v3644_v29 = vld [vmem:[#allocation16_spill] sm:$0xff] }
 0x4b8   :  { %v1920_v62 = vpop.eup %1919 }
 0x4b9   :  { %v1145_v10 = vadd.f32 1.0, %v1920_v62 }
 0x4ba   :  { %v1922_v16 = vpop.eup %1921 }
 0x4bb   :  { %v1146_v25 = vmul.f32 0.5, %v1145_v10  ;;  %v1149_v23 = vadd.f32 1.0, %v1922_v16  ;;  %v1924_v58 = vpop.eup %1923  ;;  %v3642_v10 = vld [vmem:[#allocation14_spill] sm:$0xff] }
 0x4bc   :  { %v1926_v33 = vpop.eup %1925 }
 0x4bd   :  { %v1150_v21 = vmul.f32 0.5, %v1149_v23  ;;  %v1160_v31 = vmul.f32 %v1924_v58, %v1146_v25  ;;  %v1154_v7 = vadd.f32 1.0, %v1926_v33  ;;  %v3645_v25 = vld [vmem:[#allocation7_spill] sm:$0xff]  ;;  %v3208_v23 = vld [vmem:[%s3428_s2 + $0x78] sm:$0xff]  ;;  %v3649_v58 = vld [vmem:[#allocation8_spill] sm:$0xff] }
 0x4be   :  { %3646 = vst [vmem:[#allocation11_spill] sm:$0xff] %v3208_v23  ;;  %v3229_v33 = vld [vmem:[%s3428_s2 + $0x50] sm:$0xff] }
 0x4bf   :  { %v1159_v27 = vmul.f32 %v1157_v18, %v1150_v21  ;;  %v1155_v35 = vmul.f32 0.5, %v1154_v7  ;;  %v3647_v21 = vld [vmem:[#allocation18_spill] sm:$0xff]  ;;  %v3215_v18 = vld [vmem:[%s3428_s2 + $0x70] sm:$0xff]  ;;  %3652 = vst [vmem:[#allocation23_spill] sm:$0xff] %v3229_v33 }
 0x4c0   :  { %3648 = vst [vmem:[#allocation22_spill] sm:$0xff] %v3215_v18  ;;  %v3653_v7 = vld [vmem:[#allocation9_spill] sm:$0xff] }
 0x4c1   :  { %v3152_v45 = vadd.f32 %v1160_v31, %v1159_v27  ;;  %v3222_v27 = vld [vmem:[%s3428_s2 + $0x58] sm:$0xff]  ;;  %v3651_v31 = vld [vmem:[#allocation19_spill] sm:$0xff] }
 0x4c2   :  { %3650 = vst [vmem:[#allocation12_spill] sm:$0xff] %v3222_v27 }
 0x4c3   :  { %1927 = vtanh.f32 %v3152_v45 }
 0x4d0   :  { %v1928_v36 = vpop.eup %1927 }
 0x4d1   :  { %v1163_v62 = vmul.f32 %v1928_v36, %v1155_v35  ;;  %v3236_v35 = vld [vmem:[%s3428_s2 + $0x38] sm:$0xff]  ;;  %v3655_v36 = vld [vmem:[#allocation20_spill] sm:$0xff] }
 0x4d2   :  { %3654 = vst [vmem:[#allocation13_spill] sm:$0xff] %v3236_v35 }
 0x4d3   :  { %v1165_v61 = vrot.slane %v1163_v62, 4  ;;  %v3156_v16 = vsel %vm1716_vm4, %v2809_v46, %v1163_v62  ;;  %v3641_v46 = vld [vmem:[#allocation28_spill] sm:$0xff]  ;;  %v3243_v62 = vld [vmem:[%s3428_s2 + $0x30] sm:$0xff] }
 0x4d4   :  { %3656 = vst [vmem:[#allocation24_spill] sm:$0xff] %v3243_v62 }
 0x4d5   :  { %1232 = vmatmul.mubr.f32.vlgmr.msra.gmra.mxu0 %v1165_v61  ;;  %1303 = vmatmul.mubr.f32.vlgmr.msra.gmra.mxu1 %v1165_v61  ;;  %v3657_v61 = vld [vmem:[#allocation10_spill] sm:$0xff] }
 0x4d6   :  { %1350 = vmatpush1.msra.mxu0 %v2814_v56  ;;  %1421 = vmatpush1.msra.mxu1 %v2820_v0 }
 0x4d7   :  { %1351 = vmatprep.subr.mxu0 %v2826_v3  ;;  %1422 = vmatprep.subr.mxu1 %v2832_v4 }
 0x4d8   :  { %1352 = vmatpush1.msra.mxu0 %v2838_v8  ;;  %1423 = vmatpush1.msra.mxu1 %v2844_v11 }
 0x4d9   :  { %1353 = vmatprep.subr.mxu0 %v2850_v13  ;;  %1424 = vmatprep.subr.mxu1 %v2856_v15 }
 0x4da   :  { %1354 = vmatpush1.msra.mxu0 %v2862_v17  ;;  %1425 = vmatpush1.msra.mxu1 %v2868_v20 }
 0x4db   :  { %1355 = vmatprep.subr.mxu0 %v2874_v22  ;;  %1426 = vmatprep.subr.mxu1 %v2880_v24 }
 0x4dc   :  { %1356 = vmatpush1.msra.mxu0 %v2886_v26  ;;  %1427 = vmatpush1.msra.mxu1 %v2892_v28 }
 0x4dd   :  { %1357 = vmatprep.subr.mxu0 %v2898_v30  ;;  %1428 = vmatprep.subr.mxu1 %v2904_v32 }
 0x4de   :  { %1358 = vmatpush1.msra.mxu0 %v2910_v37  ;;  %1429 = vmatpush1.msra.mxu1 %v2916_v38 }
 0x4df   :  { %1359 = vmatprep.subr.mxu0 %v2922_v39  ;;  %1430 = vmatprep.subr.mxu1 %v2928_v40 }
 0x4e0   :  { %1360 = vmatpush1.msra.mxu0 %v2934_v41  ;;  %1431 = vmatpush1.msra.mxu1 %v2940_v42 }
 0x4e1   :  { %1361 = vmatprep.subr.mxu0 %v2946_v43  ;;  %1432 = vmatprep.subr.mxu1 %v2952_v44 }
 0x4e2   :  { %1362 = vmatpush1.msra.mxu0 %v2958_v47  ;;  %1433 = vmatpush1.msra.mxu1 %v2964_v49 }
 0x4e3   :  { %1363 = vmatprep.subr.mxu0 %v2970_v51  ;;  %1434 = vmatprep.subr.mxu1 %v2976_v53 }
 0x4e4   :  { %1364 = vmatpush1.msra.mxu0 %v2982_v54  ;;  %1435 = vmatpush1.msra.mxu1 %v2988_v55 }
 0x4e5   :  { %1365 = vmatprep.subr.mxu0 %v2994_v57  ;;  %1436 = vmatprep.subr.mxu1 %v3000_v59 }
 0x4e6   :  { %1366 = vmatpush1.msra.mxu0 %v3006_v19  ;;  %1437 = vmatpush1.msra.mxu1 %v3012_v50 }
 0x4e7   :  { %1367 = vmatprep.subr.mxu0 %v3018_v14  ;;  %1438 = vmatprep.subr.mxu1 %v3024_v2 }
 0x4e8   :  { %1368 = vmatpush1.msra.mxu0 %v3030_v5  ;;  %1439 = vmatpush1.msra.mxu1 %v3036_v52 }
 0x4e9   :  { %1369 = vmatprep.subr.mxu0 %v3042_v12  ;;  %1440 = vmatprep.subr.mxu1 %v3048_v1 }
 0x4ea   :  { %1370 = vmatpush1.msra.mxu0 %v3054_v60  ;;  %1441 = vmatpush1.msra.mxu1 %v3640_v63 }
 0x4eb   :  { %1371 = vmatprep.subr.mxu0 %v3641_v46  ;;  %1442 = vmatprep.subr.mxu1 %v3642_v10 }
 0x4ec   :  { %1372 = vmatpush1.msra.mxu0 %v3643_v34  ;;  %1443 = vmatpush1.msra.mxu1 %v3644_v29 }
 0x4ed   :  { %1373 = vmatprep.subr.mxu0 %v3645_v25  ;;  %1444 = vmatprep.subr.mxu1 %v3208_v23  ;;  %v3664_v25 = vld [vmem:[#allocation27_spill] sm:$0xff] }
 0x4ee   :  { %1374 = vmatpush1.msra.mxu0 %v3647_v21  ;;  %1445 = vmatpush1.msra.mxu1 %v3215_v18 }
 0x4ef   :  { %1375 = vmatprep.subr.mxu0 %v3649_v58  ;;  %1446 = vmatprep.subr.mxu1 %v3222_v27 }
 0x4f0   :  { %1376 = vmatpush1.msra.mxu0 %v3651_v31  ;;  %1447 = vmatpush1.msra.mxu1 %v3229_v33  ;;  %v3659_v33 = vld [vmem:[#allocation21_spill] sm:$0xff] }
 0x4f1   :  { %1377 = vmatprep.subr.mxu0 %v3653_v7  ;;  %1448 = vmatprep.subr.mxu1 %v3236_v35  ;;  %v3250_v7 = vld [vmem:[%s3428_s2 + $0x18] sm:$0xff]  ;;  %v3660_v35 = vmov 0.0  }
 0x4f2   :  { %1378 = vmatpush1.msra.mxu0 %v3655_v36  ;;  %1449 = vmatpush1.msra.mxu1 %v3243_v62  ;;  %3658 = vst [vmem:[#allocation15_spill] sm:$0xff] %v3250_v7  ;;  %v3258_v36 = vld [vmem:[%s3428_s2 + $0x10] sm:$0xff]  ;;  %v3663_v62 = vld [vmem:[#allocation3_spill] sm:$0xff] }
 0x4f3   :  { %1379 = vmatprep.subr.mxu0 %v3657_v61  ;;  %1450 = vmatprep.subr.mxu1 %v3250_v7  ;;  %3661 = vst [vmem:[#allocation25_spill] sm:$0xff] %v3258_v36  ;;  %v3662_v61 = vld [vmem:[#allocation4_spill] sm:$0xff] }
 0x4f4   :  { %1380 = vmatpush1.msra.mxu0 %v3659_v33  ;;  %1413 = vmatprep.mubr.f32.mxu0 %v3660_v35 }
 0x4f5   :  { %1451 = vmatpush1.msra.mxu1 %v3258_v36  ;;  %1484 = vmatprep.mubr.f32.mxu1 %v3660_v35 }
 0x4f6   :  { %1531 = vmatprep.subr.mxu0 %v3662_v61  ;;  %1602 = vmatprep.subr.mxu1 %v3663_v62 }
 0x595   :  { %v1233_v31 = vpop.f32.mrf.mxu0  ;;  %v1304_v7 = vpop.f32.mrf.mxu1 }
 0x596   :  { %v1313_v27 = vrot.slane %v1233_v31, 3  ;;  %v1315_v23 = vrot.slane %v1304_v7, 3 }
 0x597   :  { %v1235_v58 = vpop.f32.mrf.mxu0  ;;  %v1306_v36 = vpop.f32.mrf.mxu1 }
 0x598   :  { %v1321_v33 = vadd.f32 %v1313_v27, %v2550_v9  ;;  %v1314_v18 = vrot.slane %v1235_v58, 3  ;;  %v1323_v35 = vadd.f32 %v1315_v23, %v2556_v6  ;;  %v1316_v61 = vrot.slane %v1306_v36, 3 }
 0x59a   :  { %v1325_v21 = vmul.f32 0.5, %v1321_v33  ;;  %v1322_v29 = vadd.f32 %v1314_v18, %v3664_v25  ;;  %v1324_v62 = vadd.f32 %v1316_v61, %v2559_v48  ;;  %v1339_v18 = vrot.slane %v3152_v45, 7  ;;  %v3665_v45 = vld [vmem:[#allocation5_spill] sm:$0xff] }
 0x59c   :  { %1929 = vtanh.f32 %v1325_v21  ;;  %v1329_v34 = vmul.f32 0.5, %v1322_v29  ;;  %v1334_v31 = vmul.f32 0.5, %v1324_v62 }
 0x59e   :  { %1931 = vtanh.f32 %v1329_v34 }
 0x59f   :  { %1933 = vtanh.f32 %v1323_v35 }
 0x5a0   :  { %1935 = vtanh.f32 %v1334_v31 }
 0x5a9   :  { %v1930_v10 = vpop.eup %1929 }
 0x5aa   :  { %v1327_v46 = vadd.f32 1.0, %v1930_v10 }
 0x5ab   :  { %v1932_v63 = vpop.eup %1931 }
 0x5ac   :  { %v1328_v27 = vmul.f32 0.5, %v1327_v46  ;;  %v1331_v58 = vadd.f32 1.0, %v1932_v63  ;;  %v1934_v21 = vpop.eup %1933 }
 0x5ad   :  { %v1936_v34 = vpop.eup %1935 }
 0x5ae   :  { %v1332_v33 = vmul.f32 0.5, %v1331_v58  ;;  %v1342_v7 = vmul.f32 %v1934_v21, %v1328_v27  ;;  %v1336_v23 = vadd.f32 1.0, %v1936_v34 }
 0x5b0   :  { %v1341_v29 = vmul.f32 %v1339_v18, %v1332_v33  ;;  %v1337_v35 = vmul.f32 0.5, %v1336_v23 }
 0x5b2   :  { %v3269_v25 = vadd.f32 %v1342_v7, %v1341_v29 }
 0x5b4   :  { %1937 = vtanh.f32 %v3269_v25  ;;  %v1521_v62 = vrot.slane %v3269_v25, 7  ;;  %v1739_v25 = vld [vmem:[%s3431_s4 + $0x78] sm:$0xff] }
 0x5c1   :  { %v1938_v36 = vpop.eup %1937 }
 0x5c2   :  { %v1345_v10 = vmul.f32 %v1938_v36, %v1337_v35  ;;  %v1738_v36 = vld [vmem:[%s3431_s4 + $0x70] sm:$0xff] }
 0x5c4   :  { %v1347_v61 = vrot.slane %v1345_v10, 5  ;;  %v3273_v63 = vsel %vm1718_vm5, %v3156_v16, %v1345_v10  ;;  %v1737_v10 = vld [vmem:[%s3431_s4 + $0x68] sm:$0xff] }
 0x5c6   :  { %1414 = vmatmul.mubr.f32.vlgmr.msra.gmra.mxu0 %v1347_v61  ;;  %1485 = vmatmul.mubr.f32.vlgmr.msra.gmra.mxu1 %v1347_v61  ;;  %v1736_v61 = vld [vmem:[%s3431_s4 + $0x60] sm:$0xff] }
 0x5c7   :  { %1532 = vmatpush1.msra.mxu0 %v2814_v56  ;;  %1603 = vmatpush1.msra.mxu1 %v2820_v0  ;;  %v3666_v56 = vld [vmem:[#allocation28_spill] sm:$0xff]  ;;  %v3667_v0 = vld [vmem:[#allocation14_spill] sm:$0xff] }
 0x5c8   :  { %1533 = vmatprep.subr.mxu0 %v2826_v3  ;;  %1604 = vmatprep.subr.mxu1 %v2832_v4  ;;  %v3668_v3 = vld [vmem:[#allocation6_spill] sm:$0xff]  ;;  %v3669_v4 = vld [vmem:[#allocation16_spill] sm:$0xff] }
 0x5c9   :  { %1534 = vmatpush1.msra.mxu0 %v2838_v8  ;;  %1605 = vmatpush1.msra.mxu1 %v2844_v11  ;;  %v3670_v8 = vld [vmem:[#allocation7_spill] sm:$0xff] }
 0x5ca   :  { %1535 = vmatprep.subr.mxu0 %v2850_v13  ;;  %1606 = vmatprep.subr.mxu1 %v2856_v15  ;;  %v3671_v11 = vld [vmem:[#allocation11_spill] sm:$0xff]  ;;  %v3672_v13 = vld [vmem:[#allocation18_spill] sm:$0xff] }
 0x5cb   :  { %1536 = vmatpush1.msra.mxu0 %v2862_v17  ;;  %1607 = vmatpush1.msra.mxu1 %v2868_v20  ;;  %v3673_v15 = vld [vmem:[#allocation22_spill] sm:$0xff]  ;;  %v3674_v17 = vld [vmem:[#allocation8_spill] sm:$0xff] }
 0x5cc   :  { %1537 = vmatprep.subr.mxu0 %v2874_v22  ;;  %1608 = vmatprep.subr.mxu1 %v2880_v24  ;;  %v3675_v20 = vld [vmem:[#allocation12_spill] sm:$0xff]  ;;  %v3676_v22 = vld [vmem:[#allocation19_spill] sm:$0xff] }
 0x5cd   :  { %1538 = vmatpush1.msra.mxu0 %v2886_v26  ;;  %1609 = vmatpush1.msra.mxu1 %v2892_v28  ;;  %v3677_v24 = vld [vmem:[#allocation23_spill] sm:$0xff]  ;;  %v3678_v26 = vld [vmem:[#allocation9_spill] sm:$0xff] }
 0x5ce   :  { %1539 = vmatprep.subr.mxu0 %v2898_v30  ;;  %1610 = vmatprep.subr.mxu1 %v2904_v32  ;;  %v3679_v28 = vld [vmem:[#allocation13_spill] sm:$0xff]  ;;  %v3680_v30 = vld [vmem:[#allocation20_spill] sm:$0xff] }
 0x5cf   :  { %1540 = vmatpush1.msra.mxu0 %v2910_v37  ;;  %1611 = vmatpush1.msra.mxu1 %v2916_v38  ;;  %v3681_v32 = vld [vmem:[#allocation24_spill] sm:$0xff]  ;;  %v3682_v37 = vld [vmem:[#allocation10_spill] sm:$0xff]  ;;  %v3683_v38 = vld [vmem:[#allocation15_spill] sm:$0xff] }
 0x5d0   :  { %1541 = vmatprep.subr.mxu0 %v2922_v39  ;;  %1612 = vmatprep.subr.mxu1 %v2928_v40  ;;  %v3684_v39 = vld [vmem:[#allocation21_spill] sm:$0xff]  ;;  %v3685_v40 = vmov 0.0  }
 0x5d1   :  { %1542 = vmatpush1.msra.mxu0 %v2934_v41  ;;  %1613 = vmatpush1.msra.mxu1 %v2940_v42  ;;  %v3686_v41 = vld [vmem:[#allocation25_spill] sm:$0xff] }
 0x5d2   :  { %1543 = vmatprep.subr.mxu0 %v2946_v43  ;;  %1614 = vmatprep.subr.mxu1 %v2952_v44 }
 0x5d3   :  { %1544 = vmatpush1.msra.mxu0 %v2958_v47  ;;  %1615 = vmatpush1.msra.mxu1 %v2964_v49 }
 0x5d4   :  { %1545 = vmatprep.subr.mxu0 %v2970_v51  ;;  %1616 = vmatprep.subr.mxu1 %v2976_v53 }
 0x5d5   :  { %1546 = vmatpush1.msra.mxu0 %v2982_v54  ;;  %1617 = vmatpush1.msra.mxu1 %v2988_v55  ;;  %v3687_v55 = vld [vmem:[#allocation27_spill] sm:$0xff] }
 0x5d6   :  { %1547 = vmatprep.subr.mxu0 %v2994_v57  ;;  %1618 = vmatprep.subr.mxu1 %v3000_v59 }
 0x5d7   :  { %1548 = vmatpush1.msra.mxu0 %v3006_v19  ;;  %1619 = vmatpush1.msra.mxu1 %v3012_v50 }
 0x5d8   :  { %1549 = vmatprep.subr.mxu0 %v3018_v14  ;;  %1620 = vmatprep.subr.mxu1 %v3024_v2 }
 0x5d9   :  { %1550 = vmatpush1.msra.mxu0 %v3030_v5  ;;  %1621 = vmatpush1.msra.mxu1 %v3036_v52 }
 0x5da   :  { %1551 = vmatprep.subr.mxu0 %v3042_v12  ;;  %1622 = vmatprep.subr.mxu1 %v3048_v1 }
 0x5db   :  { %1552 = vmatpush1.msra.mxu0 %v3054_v60  ;;  %1623 = vmatpush1.msra.mxu1 %v3665_v45  ;;  %v1734_v45 = vld [vmem:[%s3431_s4 + $0x50] sm:$0xff] }
 0x5dc   :  { %1553 = vmatprep.subr.mxu0 %v3666_v56  ;;  %1624 = vmatprep.subr.mxu1 %v3667_v0  ;;  %v1733_v56 = vld [vmem:[%s3431_s4 + $0x48] sm:$0xff]  ;;  %v1732_v0 = vld [vmem:[%s3431_s4 + $0x40] sm:$0xff] }
 0x5dd   :  { %1554 = vmatpush1.msra.mxu0 %v3668_v3  ;;  %1625 = vmatpush1.msra.mxu1 %v3669_v4  ;;  %v1731_v3 = vld [vmem:[%s3431_s4 + $0x38] sm:$0xff]  ;;  %v1730_v4 = vld [vmem:[%s3431_s4 + $0x30] sm:$0xff] }
 0x5de   :  { %1555 = vmatprep.subr.mxu0 %v3670_v8  ;;  %1626 = vmatprep.subr.mxu1 %v3671_v11  ;;  %v1729_v8 = vld [vmem:[%s3431_s4 + $0x28] sm:$0xff]  ;;  %v1728_v11 = vld [vmem:[%s3431_s4 + $0x20] sm:$0xff] }
 0x5df   :  { %1556 = vmatpush1.msra.mxu0 %v3672_v13  ;;  %1627 = vmatpush1.msra.mxu1 %v3673_v15  ;;  %v1727_v13 = vld [vmem:[%s3431_s4 + $0x18] sm:$0xff]  ;;  %v1726_v15 = vld [vmem:[%s3431_s4 + $0x10] sm:$0xff] }
 0x5e0   :  { %1557 = vmatprep.subr.mxu0 %v3674_v17  ;;  %1628 = vmatprep.subr.mxu1 %v3675_v20  ;;  %v1725_v17 = vld [vmem:[%s3431_s4 + $0x8] sm:$0xff]  ;;  %v1724_v20 = vld [vmem:[%s3431_s4] sm:$0xff] }
 0x5e1   :  { %1558 = vmatpush1.msra.mxu0 %v3676_v22  ;;  %1629 = vmatpush1.msra.mxu1 %v3677_v24 }
 0x5e2   :  { %1559 = vmatprep.subr.mxu0 %v3678_v26  ;;  %1630 = vmatprep.subr.mxu1 %v3679_v28 }
 0x5e3   :  { %1560 = vmatpush1.msra.mxu0 %v3680_v30  ;;  %1631 = vmatpush1.msra.mxu1 %v3681_v32 }
 0x5e4   :  { %1561 = vmatprep.subr.mxu0 %v3682_v37  ;;  %1632 = vmatprep.subr.mxu1 %v3683_v38 }
 0x5e5   :  { %1562 = vmatpush1.msra.mxu0 %v3684_v39  ;;  %1595 = vmatprep.mubr.f32.mxu0 %v3685_v40 }
 0x5e6   :  { %1633 = vmatpush1.msra.mxu1 %v3686_v41  ;;  %1666 = vmatprep.mubr.f32.mxu1 %v3685_v40 }
 0x5e7   :  { %1842 = vmatprep.subr.mxu0 %v3685_v40 }
 0x686   :  { %v1415_v42 = vpop.f32.mrf.mxu0  ;;  %v1486_v44 = vpop.f32.mrf.mxu1 }
 0x687   :  { %v1495_v43 = vrot.slane %v1415_v42, 2  ;;  %v1497_v54 = vrot.slane %v1486_v44, 2 }
 0x688   :  { %v1417_v47 = vpop.f32.mrf.mxu0  ;;  %v1488_v19 = vpop.f32.mrf.mxu1 }
 0x689   :  { %v1503_v49 = vadd.f32 %v1495_v43, %v2550_v9  ;;  %v1496_v51 = vrot.slane %v1417_v47, 2  ;;  %v1505_v50 = vadd.f32 %v1497_v54, %v2556_v6  ;;  %v1498_v14 = vrot.slane %v1488_v19, 2 }
 0x68b   :  { %v1507_v53 = vmul.f32 0.5, %v1503_v49  ;;  %v1504_v57 = vadd.f32 %v1496_v51, %v3687_v55  ;;  %v1506_v2 = vadd.f32 %v1498_v14, %v2559_v48 }
 0x68d   :  { %1939 = vtanh.f32 %v1507_v53  ;;  %v1511_v59 = vmul.f32 0.5, %v1504_v57  ;;  %v1516_v5 = vmul.f32 0.5, %v1506_v2 }
 0x68f   :  { %1941 = vtanh.f32 %v1511_v59 }
 0x690   :  { %1943 = vtanh.f32 %v1505_v50 }
 0x691   :  { %1945 = vtanh.f32 %v1516_v5 }
 0x69a   :  { %v1940_v52 = vpop.eup %1939 }
 0x69b   :  { %v1509_v12 = vadd.f32 1.0, %v1940_v52 }
 0x69c   :  { %v1942_v1 = vpop.eup %1941 }
 0x69d   :  { %v1510_v60 = vmul.f32 0.5, %v1509_v12  ;;  %v1513_v16 = vadd.f32 1.0, %v1942_v1  ;;  %v1944_v31 = vpop.eup %1943  ;;  %v1824_v1 = vld [vmem:[%s3432_s5] ss:$0 sm:$0xff] }
 0x69e   :  { %v1946_v18 = vpop.eup %1945 }
 0x69f   :  { %v1514_v46 = vmul.f32 0.5, %v1513_v16  ;;  %v1524_v58 = vmul.f32 %v1944_v31, %v1510_v60  ;;  %v1518_v21 = vadd.f32 1.0, %v1946_v18 }
 0x6a1   :  { %v1523_v27 = vmul.f32 %v1521_v62, %v1514_v46  ;;  %v1519_v29 = vmul.f32 0.5, %v1518_v21 }
 0x6a3   :  { %v3345_v33 = vadd.f32 %v1524_v58, %v1523_v27 }
 0x6a5   :  { %1947 = vtanh.f32 %v3345_v33 }
 0x6b2   :  { %v1948_v7 = vpop.eup %1947 }
 0x6b3   :  { %v1527_v34 = vmul.f32 %v1948_v7, %v1519_v29 }
 0x6b5   :  { %v1529_v23 = vrot.slane %v1527_v34, 6  ;;  %v3349_v35 = vsel %vm1720_vm6, %v3273_v63, %v1527_v34  ;;  %v1735_v63 = vld [vmem:[%s3431_s4 + $0x58] sm:$0xff] }
 0x6b7   :  { %1596 = vmatmul.mubr.f32.vlgmr.msra.gmra.mxu0 %v1529_v23  ;;  %1667 = vmatmul.mubr.f32.vlgmr.msra.gmra.mxu1 %v1529_v23 }
 0x6b8   :  { %1843 = vmatpush3.msra.mxu0 %v1739_v25  ;;  %1874 = vmatprep.mubr.msk.f32.mxu0 %vm2024_vm7, %v3685_v40 }
 0x6b9   :  { %1844 = vmatprep.subr.mxu0 %v3685_v40 }
 0x6ba   :  { %1845 = vmatpush3.msra.mxu0 %v1738_v36 }
 0x6bb   :  { %1846 = vmatprep.subr.mxu0 %v3685_v40 }
 0x6bc   :  { %1847 = vmatpush3.msra.mxu0 %v1737_v10 }
 0x6bd   :  { %1848 = vmatprep.subr.mxu0 %v3685_v40 }
 0x6be   :  { %1849 = vmatpush3.msra.mxu0 %v1736_v61 }
 0x6bf   :  { %1850 = vmatprep.subr.mxu0 %v3685_v40 }
 0x6c0   :  { %1851 = vmatpush3.msra.mxu0 %v1735_v63 }
 0x6c1   :  { %1852 = vmatprep.subr.mxu0 %v3685_v40 }
 0x6c2   :  { %1853 = vmatpush3.msra.mxu0 %v1734_v45 }
 0x6c3   :  { %1854 = vmatprep.subr.mxu0 %v3685_v40 }
 0x6c4   :  { %1855 = vmatpush3.msra.mxu0 %v1733_v56 }
 0x6c5   :  { %1856 = vmatprep.subr.mxu0 %v3685_v40 }
 0x6c6   :  { %1857 = vmatpush3.msra.mxu0 %v1732_v0 }
 0x6c7   :  { %1858 = vmatprep.subr.mxu0 %v3685_v40 }
 0x6c8   :  { %1859 = vmatpush3.msra.mxu0 %v1731_v3 }
 0x6c9   :  { %1860 = vmatprep.subr.mxu0 %v3685_v40 }
 0x6ca   :  { %1861 = vmatpush3.msra.mxu0 %v1730_v4 }
 0x6cb   :  { %1862 = vmatprep.subr.mxu0 %v3685_v40 }
 0x6cc   :  { %1863 = vmatpush3.msra.mxu0 %v1729_v8 }
 0x6cd   :  { %1864 = vmatprep.subr.mxu0 %v3685_v40 }
 0x6ce   :  { %1865 = vmatpush3.msra.mxu0 %v1728_v11 }
 0x6cf   :  { %1866 = vmatprep.subr.mxu0 %v3685_v40 }
 0x6d0   :  { %1867 = vmatpush3.msra.mxu0 %v1727_v13 }
 0x6d1   :  { %1868 = vmatprep.subr.mxu0 %v3685_v40 }
 0x6d2   :  { %1869 = vmatpush3.msra.mxu0 %v1726_v15 }
 0x6d3   :  { %1870 = vmatprep.subr.mxu0 %v3685_v40 }
 0x6d4   :  { %1871 = vmatpush3.msra.mxu0 %v1725_v17 }
 0x6d5   :  { %1872 = vmatprep.subr.mxu0 %v3685_v40 }
 0x6d6   :  { %1873 = vmatpush3.msra.mxu0 %v1724_v20 }
 0x777   :  { %v1597_v22 = vpop.f32.mrf.mxu0  ;;  %v1668_v26 = vpop.f32.mrf.mxu1 }
 0x778   :  { %v1677_v24 = vrot.slane %v1597_v22, 1  ;;  %v1679_v38 = vrot.slane %v1668_v26, 1 }
 0x779   :  { %v1599_v28 = vpop.f32.mrf.mxu0  ;;  %v1670_v42 = vpop.f32.mrf.mxu1 }
 0x77a   :  { %v1685_v30 = vadd.f32 %v1677_v24, %v2550_v9  ;;  %v1678_v32 = vrot.slane %v1599_v28, 1  ;;  %v1687_v43 = vadd.f32 %v1679_v38, %v2556_v6  ;;  %v1680_v44 = vrot.slane %v1670_v42, 1 }
 0x77c   :  { %v1689_v37 = vmul.f32 0.5, %v1685_v30  ;;  %v1686_v39 = vadd.f32 %v1678_v32, %v3687_v55  ;;  %v1688_v40 = vadd.f32 %v1680_v44, %v2559_v48  ;;  %v1703_v55 = vrot.slane %v3345_v33, 7 }
 0x77e   :  { %1949 = vtanh.f32 %v1689_v37  ;;  %v1693_v41 = vmul.f32 0.5, %v1686_v39  ;;  %v1698_v47 = vmul.f32 0.5, %v1688_v40 }
 0x780   :  { %1951 = vtanh.f32 %v1693_v41 }
 0x781   :  { %1953 = vtanh.f32 %v1687_v43 }
 0x782   :  { %1955 = vtanh.f32 %v1698_v47 }
 0x78b   :  { %v1950_v49 = vpop.eup %1949 }
 0x78c   :  { %v1691_v51 = vadd.f32 1.0, %v1950_v49 }
 0x78d   :  { %v1952_v53 = vpop.eup %1951 }
 0x78e   :  { %v1692_v9 = vmul.f32 0.5, %v1691_v51  ;;  %v1695_v54 = vadd.f32 1.0, %v1952_v53  ;;  %v1954_v59 = vpop.eup %1953 }
 0x78f   :  { %v1956_v6 = vpop.eup %1955 }
 0x790   :  { %v1696_v57 = vmul.f32 0.5, %v1695_v54  ;;  %v1706_v50 = vmul.f32 %v1954_v59, %v1692_v9  ;;  %v1700_v2 = vadd.f32 1.0, %v1956_v6 }
 0x792   :  { %v1705_v19 = vmul.f32 %v1703_v55, %v1696_v57  ;;  %v1701_v5 = vmul.f32 0.5, %v1700_v2 }
 0x794   :  { %v1707_v14 = vadd.f32 %v1706_v50, %v1705_v19 }
 0x796   :  { %1957 = vtanh.f32 %v1707_v14 }
 0x7a3   :  { %v1958_v52 = vpop.eup %1957 }
 0x7a4   :  { %v1709_v48 = vmul.f32 %v1958_v52, %v1701_v5 }
 0x7a6   :  { %v1723_v12 = vsel %vm1722_vm8, %v3349_v35, %v1709_v48 }
 0x7a7   :  { %1875 = vmatmul.mubr.f32.vlgmr.msra.gmra.mxu0 %v1723_v12 }
 0x867   :  { %v1813_v60 = vpop.f32.mrf.mxu0 }
 0x868   :  { %v1814_v16 = vadd.f32 %v1824_v1, %v1813_v60 }
 0x869   :  { %v1876_v46 = vpop.f32.mrf.mxu0 }
 0x86a   :  { %1817 = vst [vmem:[%s3433_s6] sm:$0xff] %v1814_v16 }

</bundles_post_ra>
